<compile_context>
chip_gen: v5e
topology: v5e:2x2
jax: 0.10.0
libtpu: 0.0.40
codegen_flags: <defaults>
</compile_context>

<pallas_src>
import jax
import jax.numpy as jnp
from jax import lax
from jax.experimental import pallas as pl
from jax.experimental.pallas import tpu as pltpu


def make_encoder_kernel(B, L, D, H, d_ff, n_layers, eps=1e-5):
    """Fused TSTEncoder kernel for fixed (small) shapes: all layers in one call."""
    dk = D // H
    dv = D // H
    N = B * L
    inv_n = 1.0 / float(N)
    c0 = 0.7978845608028654  # sqrt(2/pi) for tanh-GELU
    f32 = jnp.float32
    bf16 = jnp.bfloat16

    def batchnorm(x, gamma, beta):
        # Training-mode BatchNorm1d over (batch*q_len) per channel, biased var.
        # One pass over x: sum and sum-of-squares together, var = E[x^2]-mean^2.
        mean = jnp.sum(x, axis=0, keepdims=True) * inv_n            # [1, D]
        msq = jnp.sum(x * x, axis=0, keepdims=True) * inv_n         # [1, D]
        var = jnp.maximum(msq - mean * mean, 0.0)
        return (x - mean) * (lax.rsqrt(var + eps) * gamma) + beta

    def kernel(x_ref, wqkv_ref, wo_ref, w1_ref, w2_ref, slab_ref, out_ref):
        x = x_ref[...].astype(f32)                                  # [N, D]

        # n_layers is small here; static unroll is fine (switch to a layer
        # grid axis with streamed weights once n_layers / shapes grow).
        for l in range(n_layers):
            wqkv = wqkv_ref[l]     # [D, 3D] bf16, Q columns pre-scaled
            wo = wo_ref[l]         # [D, D]  bf16
            w1 = w1_ref[l]         # [D, d_ff] bf16
            w2 = w2_ref[l]         # [d_ff, D] bf16
            slab = slab_ref[l]     # [8, W] f32 bias / BN-affine rows (padded)
            bqkv = slab[0:1, 0:3 * D]     # qkv bias (bq pre-scaled)
            b1 = slab[1:2, 0:d_ff]
            bo = slab[2:3, 0:D]
            g1 = slab[3:4, 0:D]
            be1 = slab[4:5, 0:D]
            b2 = slab[5:6, 0:D]
            g2 = slab[6:7, 0:D]
            be2 = slab[7:8, 0:D]

            # ---------- fused QKV projection (bf16 operands, f32 acc) ----------
            qkv = jnp.dot(x.astype(bf16), wqkv,
                          preferred_element_type=f32) + bqkv        # [N, 3D]

            # ---------- attention: inline softmax per (batch, head) ----------
            ctx_rows = []
            for b in range(B):
                qkv_b = qkv[b * L:(b + 1) * L, :]                   # [L, 3D]
                heads = []
                for h in range(H):
                    # Each head's q/k/v sliced exactly once per layer.
                    qh = qkv_b[:, h * dk:(h + 1) * dk]              # [L, dk]
                    kh = qkv_b[:, D + h * dk:D + (h + 1) * dk]      # [L, dk]
                    vh = qkv_b[:, 2 * D + h * dv:2 * D + (h + 1) * dv]
                    s = lax.dot_general(
                        qh.astype(bf16), kh.astype(bf16),
                        (((1,), (1,)), ((), ())),
                        preferred_element_type=f32)                 # [L, L]
                    s = s - jnp.max(s, axis=-1, keepdims=True)
                    p = jnp.exp(s)
                    p = p / jnp.sum(p, axis=-1, keepdims=True)      # exact divide
                    heads.append(jnp.dot(p.astype(bf16), vh.astype(bf16),
                                         preferred_element_type=f32))
                ctx_rows.append(jnp.concatenate(heads, axis=-1))    # [L, D]
            ctx = jnp.concatenate(ctx_rows, axis=0)                 # [N, D]

            # ---------- output projection + residual + BatchNorm ----------
            x = x + jnp.dot(ctx.astype(bf16), wo,
                            preferred_element_type=f32) + bo
            x = batchnorm(x, g1, be1)

            # ---------- position-wise FFN (gelu) + residual + BatchNorm ----------
            h1 = jnp.dot(x.astype(bf16), w1, preferred_element_type=f32) + b1
            # TODO(synk): PyTorch nn.GELU uses exact erf; tanh approximation here.
            h1 = 0.5 * h1 * (1.0 + jnp.tanh(c0 * (h1 + 0.044715 * h1 * h1 * h1)))
            x = x + jnp.dot(h1.astype(bf16), w2, preferred_element_type=f32) + b2
            x = batchnorm(x, g2, be2)

        out_ref[...] = x

    return kernel


def prepare_params(layer_params, n_heads):
    """One-time packing of per-layer params (call at init, NOT per forward):
      * attention scale folded into the Q weight/bias,
      * matmul weights cast to bf16 (f32 accumulation stays in-kernel),
      * all bias / BN-affine vectors packed into one zero-padded f32 slab/layer.
    """
    D = layer_params[0]["wq"].shape[0]
    d_ff = layer_params[0]["w1"].shape[1]
    scale = float((D // n_heads) ** -0.5)
    W = max(3 * D, d_ff)
    bf16 = jnp.bfloat16

    def pad(v):  # [1, w] -> [1, W]
        return jnp.pad(v, ((0, 0), (0, W - v.shape[1])))

    wqkv, wo, w1, w2, slab = [], [], [], [], []
    for p in layer_params:
        wqkv.append(jnp.concatenate([p["wq"] * scale, p["wk"], p["wv"]],
                                    axis=1).astype(bf16))           # [D, 3D]
        wo.append(p["wo"].astype(bf16))                              # [D, D]
        w1.append(p["w1"].astype(bf16))                              # [D, d_ff]
        w2.append(p["w2"].astype(bf16))                              # [d_ff, D]
        bqkv = jnp.concatenate([p["bq"] * scale, p["bk"], p["bv"]], axis=1)
        slab.append(jnp.concatenate(
            [pad(bqkv), pad(p["b1"]), pad(p["bo"]), pad(p["g1"]), pad(p["be1"]),
             pad(p["b2"]), pad(p["g2"]), pad(p["be2"])], axis=0))    # [8, W]
    return {
        "wqkv": jnp.stack(wqkv), "wo": jnp.stack(wo), "w1": jnp.stack(w1),
        "w2": jnp.stack(w2), "slab": jnp.stack(slab),
        "n_heads": n_heads, "d_ff": d_ff,
    }


def tst_encoder_apply(src, packed):
    """TSTEncoder.forward (res_attention=False): all layers in one pallas_call."""
    B, L, D = src.shape
    H = packed["n_heads"]
    d_ff = packed["d_ff"]
    n_layers = int(packed["wqkv"].shape[0])
    N = B * L
    dk = D // H

    kernel = make_encoder_kernel(B, L, D, H, d_ff, n_layers)

    # Advisory cost estimate so XLA can schedule around the custom call.
    per_layer_flops = (2 * N * D * 3 * D                # fused QKV projection
                       + B * H * 2 * L * L * dk * 2     # scores + context
                       + 2 * N * D * D                  # output projection
                       + 4 * N * D * d_ff)              # FFN (two matmuls)
    transcendentals = n_layers * (B * H * L * L + N * d_ff)   # exp + tanh
    bytes_weights = 2 * n_layers * (3 * D * D + D * D + 2 * D * d_ff)  # bf16
    bytes_slab = 4 * n_layers * int(packed["slab"].shape[1]) * \
        int(packed["slab"].shape[2])
    cost = pl.CostEstimate(
        flops=n_layers * per_layer_flops,
        transcendentals=transcendentals,
        bytes_accessed=2 * N * D * 4 + bytes_weights + bytes_slab)

    x_flat = src.reshape(N, D)  # contiguous-row I/O; reshape is free in XLA
    out_flat = pl.pallas_call(
        kernel,
        out_shape=jax.ShapeDtypeStruct((N, D), jnp.float32),
        in_specs=[pl.BlockSpec(memory_space=pltpu.MemorySpace.VMEM)] * 6,
        out_specs=pl.BlockSpec(memory_space=pltpu.MemorySpace.VMEM),
        cost_estimate=cost,
        # NOTE: at production shapes set pltpu.CompilerParams(vmem_limit_bytes=...)
        # (v5e scoped default is only 16 MiB) and stream weights per layer.
    )(x_flat, packed["wqkv"], packed["wo"], packed["w1"], packed["w2"],
      packed["slab"])
    return out_flat.reshape(B, L, D)


def init_layer_params(key, d_model, d_ff):
    """Deterministic synthetic init; shapes match the PyTorch layer's params
    (linear weights stored transposed as [in, out] for x @ W)."""
    ks = jax.random.split(key, 12)
    s = 0.1
    f32 = jnp.float32
    return {
        "wq": jax.random.normal(ks[0], (d_model, d_model), f32) * s,
        "bq": jax.random.normal(ks[1], (1, d_model), f32) * s,
        "wk": jax.random.normal(ks[2], (d_model, d_model), f32) * s,
        "bk": jax.random.normal(ks[3], (1, d_model), f32) * s,
        "wv": jax.random.normal(ks[4], (d_model, d_model), f32) * s,
        "bv": jax.random.normal(ks[5], (1, d_model), f32) * s,
        "wo": jax.random.normal(ks[6], (d_model, d_model), f32) * s,
        "bo": jax.random.normal(ks[7], (1, d_model), f32) * s,
        "g1": jnp.ones((1, d_model), f32),      # BatchNorm1d weight
        "be1": jnp.zeros((1, d_model), f32),    # BatchNorm1d bias
        "w1": jax.random.normal(ks[8], (d_model, d_ff), f32) * s,
        "b1": jax.random.normal(ks[9], (1, d_ff), f32) * s,
        "w2": jax.random.normal(ks[10], (d_ff, d_model), f32) * s,
        "b2": jax.random.normal(ks[11], (1, d_model), f32) * s,
        "g2": jnp.ones((1, d_model), f32),
        "be2": jnp.zeros((1, d_model), f32),
    }


if __name__ == "__main__":
    # Shapes consistent with TSTEncoder(q_len=8, d_model=32, n_heads=4,
    # d_ff=64, norm='BatchNorm', n_layers=2) applied to src [bs, q_len, d_model].
    B, L, D, H, D_FF, N_LAYERS = 2, 8, 32, 4, 64, 2

    root = jax.random.PRNGKey(0)
    k_x, k_p = jax.random.split(root)
    src = jax.random.normal(k_x, (B, L, D), jnp.float32)

    layer_keys = jax.random.split(k_p, N_LAYERS)
    layer_params = [init_layer_params(k, D, D_FF) for k in layer_keys]

    packed = prepare_params(layer_params, n_heads=H)  # one-time packing
    out = tst_encoder_apply(src, packed)
    out = jax.block_until_ready(out)
    assert out.shape == (B, L, D) and out.dtype == jnp.float32
    assert bool(jnp.all(jnp.isfinite(out)))
    print("KERNEL_OK")
</pallas_src>

<mosaic_0001>
module attributes {stable_mosaic.version = 11 : i64} {
  func.func @kernel(%arg0: memref<16x32xf32, #tpu.memory_space<vmem>>, %arg1: memref<2x32x96xbf16, #tpu.memory_space<vmem>>, %arg2: memref<2x32x32xbf16, #tpu.memory_space<vmem>>, %arg3: memref<2x32x64xbf16, #tpu.memory_space<vmem>>, %arg4: memref<2x64x32xbf16, #tpu.memory_space<vmem>>, %arg5: memref<2x8x96xf32, #tpu.memory_space<vmem>>, %arg6: memref<16x32xf32, #tpu.memory_space<vmem>>) attributes {dimension_semantics = [], scalar_prefetch = 0 : i64, scratch_operands = 0 : i64, tpu.core_type = #tpu.core_type<tc>} {
    %c0 = arith.constant 0 : index
    %c0_0 = arith.constant 0 : index
    %0 = vector.load %arg0[%c0, %c0_0] : memref<16x32xf32, #tpu.memory_space<vmem>>, vector<16x32xf32>
    %c0_1 = arith.constant 0 : index
    %c0_2 = arith.constant 0 : index
    %c0_3 = arith.constant 0 : index
    %1 = vector.load %arg1[%c0_1, %c0_2, %c0_3] : memref<2x32x96xbf16, #tpu.memory_space<vmem>>, vector<1x32x96xbf16>
    %2 = vector.shape_cast %1 : vector<1x32x96xbf16> to vector<32x96xbf16>
    %c0_4 = arith.constant 0 : index
    %c0_5 = arith.constant 0 : index
    %c0_6 = arith.constant 0 : index
    %3 = vector.load %arg2[%c0_4, %c0_5, %c0_6] : memref<2x32x32xbf16, #tpu.memory_space<vmem>>, vector<1x32x32xbf16>
    %4 = vector.shape_cast %3 : vector<1x32x32xbf16> to vector<32x32xbf16>
    %c0_7 = arith.constant 0 : index
    %c0_8 = arith.constant 0 : index
    %c0_9 = arith.constant 0 : index
    %5 = vector.load %arg3[%c0_7, %c0_8, %c0_9] : memref<2x32x64xbf16, #tpu.memory_space<vmem>>, vector<1x32x64xbf16>
    %6 = vector.shape_cast %5 : vector<1x32x64xbf16> to vector<32x64xbf16>
    %c0_10 = arith.constant 0 : index
    %c0_11 = arith.constant 0 : index
    %c0_12 = arith.constant 0 : index
    %7 = vector.load %arg4[%c0_10, %c0_11, %c0_12] : memref<2x64x32xbf16, #tpu.memory_space<vmem>>, vector<1x64x32xbf16>
    %8 = vector.shape_cast %7 : vector<1x64x32xbf16> to vector<64x32xbf16>
    %c0_13 = arith.constant 0 : index
    %c0_14 = arith.constant 0 : index
    %c0_15 = arith.constant 0 : index
    %9 = vector.load %arg5[%c0_13, %c0_14, %c0_15] : memref<2x8x96xf32, #tpu.memory_space<vmem>>, vector<1x8x96xf32>
    %10 = vector.shape_cast %9 : vector<1x8x96xf32> to vector<8x96xf32>
    %11 = vector.extract_strided_slice %10 {offsets = [0, 0], sizes = [1, 96], strides = [1, 1]} : vector<8x96xf32> to vector<1x96xf32>
    %12 = vector.extract_strided_slice %10 {offsets = [1, 0], sizes = [1, 64], strides = [1, 1]} : vector<8x96xf32> to vector<1x64xf32>
    %13 = vector.extract_strided_slice %10 {offsets = [2, 0], sizes = [1, 32], strides = [1, 1]} : vector<8x96xf32> to vector<1x32xf32>
    %14 = vector.extract_strided_slice %10 {offsets = [3, 0], sizes = [1, 32], strides = [1, 1]} : vector<8x96xf32> to vector<1x32xf32>
    %15 = vector.extract_strided_slice %10 {offsets = [4, 0], sizes = [1, 32], strides = [1, 1]} : vector<8x96xf32> to vector<1x32xf32>
    %16 = vector.extract_strided_slice %10 {offsets = [5, 0], sizes = [1, 32], strides = [1, 1]} : vector<8x96xf32> to vector<1x32xf32>
    %17 = vector.extract_strided_slice %10 {offsets = [6, 0], sizes = [1, 32], strides = [1, 1]} : vector<8x96xf32> to vector<1x32xf32>
    %18 = vector.extract_strided_slice %10 {offsets = [7, 0], sizes = [1, 32], strides = [1, 1]} : vector<8x96xf32> to vector<1x32xf32>
    %19 = arith.truncf %0 : vector<16x32xf32> to vector<16x32xbf16>
    %cst = arith.constant dense<0.000000e+00> : vector<16x96xf32>
    %20 = tpu.matmul %19, %2, %cst {dimension_numbers = #tpu.dot_dimension_numbers<[1], [0], [0], [1], [0, 0, 1, 1], [], []>} : vector<16x32xbf16>, vector<32x96xbf16>, vector<16x96xf32> -> vector<16x96xf32>
    %21 = vector.broadcast %11 : vector<1x96xf32> to vector<16x96xf32>
    %22 = arith.addf %20, %21 : vector<16x96xf32>
    %23 = vector.extract_strided_slice %22 {offsets = [0, 0], sizes = [8, 96], strides = [1, 1]} : vector<16x96xf32> to vector<8x96xf32>
    %24 = vector.extract_strided_slice %23 {offsets = [0, 0], sizes = [8, 8], strides = [1, 1]} : vector<8x96xf32> to vector<8x8xf32>
    %25 = vector.extract_strided_slice %23 {offsets = [0, 32], sizes = [8, 8], strides = [1, 1]} : vector<8x96xf32> to vector<8x8xf32>
    %26 = vector.extract_strided_slice %23 {offsets = [0, 64], sizes = [8, 8], strides = [1, 1]} : vector<8x96xf32> to vector<8x8xf32>
    %27 = arith.truncf %24 : vector<8x8xf32> to vector<8x8xbf16>
    %28 = arith.truncf %25 : vector<8x8xf32> to vector<8x8xbf16>
    %cst_16 = arith.constant dense<0.000000e+00> : vector<8x8xf32>
    %29 = tpu.matmul %27, %28, %cst_16 {dimension_numbers = #tpu.dot_dimension_numbers<[1], [1], [0], [0], [0, 0, 1, 0], [], []>} : vector<8x8xbf16>, vector<8x8xbf16>, vector<8x8xf32> -> vector<8x8xf32>
    %cst_17 = arith.constant dense<0xFF800000> : vector<8xf32>
    %30 = vector.multi_reduction <maximumf>, %29, %cst_17 [1] : vector<8x8xf32> to vector<8xf32>
    %31 = vector.shape_cast %30 : vector<8xf32> to vector<8x1xf32>
    %32 = vector.broadcast %31 : vector<8x1xf32> to vector<8x8xf32>
    %33 = arith.subf %29, %32 : vector<8x8xf32>
    %34 = math.exp %33 : vector<8x8xf32>
    %cst_18 = arith.constant dense<0.000000e+00> : vector<8xf32>
    %35 = vector.multi_reduction <add>, %34, %cst_18 [1] : vector<8x8xf32> to vector<8xf32>
    %36 = vector.shape_cast %35 : vector<8xf32> to vector<8x1xf32>
    %37 = vector.broadcast %36 : vector<8x1xf32> to vector<8x8xf32>
    %38 = arith.divf %34, %37 : vector<8x8xf32>
    %39 = arith.truncf %38 : vector<8x8xf32> to vector<8x8xbf16>
    %40 = arith.truncf %26 : vector<8x8xf32> to vector<8x8xbf16>
    %cst_19 = arith.constant dense<0.000000e+00> : vector<8x8xf32>
    %41 = tpu.matmul %39, %40, %cst_19 {dimension_numbers = #tpu.dot_dimension_numbers<[1], [0], [0], [1], [0, 0, 1, 1], [], []>} : vector<8x8xbf16>, vector<8x8xbf16>, vector<8x8xf32> -> vector<8x8xf32>
    %42 = vector.extract_strided_slice %23 {offsets = [0, 8], sizes = [8, 8], strides = [1, 1]} : vector<8x96xf32> to vector<8x8xf32>
    %43 = vector.extract_strided_slice %23 {offsets = [0, 40], sizes = [8, 8], strides = [1, 1]} : vector<8x96xf32> to vector<8x8xf32>
    %44 = vector.extract_strided_slice %23 {offsets = [0, 72], sizes = [8, 8], strides = [1, 1]} : vector<8x96xf32> to vector<8x8xf32>
    %45 = arith.truncf %42 : vector<8x8xf32> to vector<8x8xbf16>
    %46 = arith.truncf %43 : vector<8x8xf32> to vector<8x8xbf16>
    %cst_20 = arith.constant dense<0.000000e+00> : vector<8x8xf32>
    %47 = tpu.matmul %45, %46, %cst_20 {dimension_numbers = #tpu.dot_dimension_numbers<[1], [1], [0], [0], [0, 0, 1, 0], [], []>} : vector<8x8xbf16>, vector<8x8xbf16>, vector<8x8xf32> -> vector<8x8xf32>
    %cst_21 = arith.constant dense<0xFF800000> : vector<8xf32>
    %48 = vector.multi_reduction <maximumf>, %47, %cst_21 [1] : vector<8x8xf32> to vector<8xf32>
    %49 = vector.shape_cast %48 : vector<8xf32> to vector<8x1xf32>
    %50 = vector.broadcast %49 : vector<8x1xf32> to vector<8x8xf32>
    %51 = arith.subf %47, %50 : vector<8x8xf32>
    %52 = math.exp %51 : vector<8x8xf32>
    %cst_22 = arith.constant dense<0.000000e+00> : vector<8xf32>
    %53 = vector.multi_reduction <add>, %52, %cst_22 [1] : vector<8x8xf32> to vector<8xf32>
    %54 = vector.shape_cast %53 : vector<8xf32> to vector<8x1xf32>
    %55 = vector.broadcast %54 : vector<8x1xf32> to vector<8x8xf32>
    %56 = arith.divf %52, %55 : vector<8x8xf32>
    %57 = arith.truncf %56 : vector<8x8xf32> to vector<8x8xbf16>
    %58 = arith.truncf %44 : vector<8x8xf32> to vector<8x8xbf16>
    %cst_23 = arith.constant dense<0.000000e+00> : vector<8x8xf32>
    %59 = tpu.matmul %57, %58, %cst_23 {dimension_numbers = #tpu.dot_dimension_numbers<[1], [0], [0], [1], [0, 0, 1, 1], [], []>} : vector<8x8xbf16>, vector<8x8xbf16>, vector<8x8xf32> -> vector<8x8xf32>
    %60 = vector.extract_strided_slice %23 {offsets = [0, 16], sizes = [8, 8], strides = [1, 1]} : vector<8x96xf32> to vector<8x8xf32>
    %61 = vector.extract_strided_slice %23 {offsets = [0, 48], sizes = [8, 8], strides = [1, 1]} : vector<8x96xf32> to vector<8x8xf32>
    %62 = vector.extract_strided_slice %23 {offsets = [0, 80], sizes = [8, 8], strides = [1, 1]} : vector<8x96xf32> to vector<8x8xf32>
    %63 = arith.truncf %60 : vector<8x8xf32> to vector<8x8xbf16>
    %64 = arith.truncf %61 : vector<8x8xf32> to vector<8x8xbf16>
    %cst_24 = arith.constant dense<0.000000e+00> : vector<8x8xf32>
    %65 = tpu.matmul %63, %64, %cst_24 {dimension_numbers = #tpu.dot_dimension_numbers<[1], [1], [0], [0], [0, 0, 1, 0], [], []>} : vector<8x8xbf16>, vector<8x8xbf16>, vector<8x8xf32> -> vector<8x8xf32>
    %cst_25 = arith.constant dense<0xFF800000> : vector<8xf32>
    %66 = vector.multi_reduction <maximumf>, %65, %cst_25 [1] : vector<8x8xf32> to vector<8xf32>
    %67 = vector.shape_cast %66 : vector<8xf32> to vector<8x1xf32>
    %68 = vector.broadcast %67 : vector<8x1xf32> to vector<8x8xf32>
    %69 = arith.subf %65, %68 : vector<8x8xf32>
    %70 = math.exp %69 : vector<8x8xf32>
    %cst_26 = arith.constant dense<0.000000e+00> : vector<8xf32>
    %71 = vector.multi_reduction <add>, %70, %cst_26 [1] : vector<8x8xf32> to vector<8xf32>
    %72 = vector.shape_cast %71 : vector<8xf32> to vector<8x1xf32>
    %73 = vector.broadcast %72 : vector<8x1xf32> to vector<8x8xf32>
    %74 = arith.divf %70, %73 : vector<8x8xf32>
    %75 = arith.truncf %74 : vector<8x8xf32> to vector<8x8xbf16>
    %76 = arith.truncf %62 : vector<8x8xf32> to vector<8x8xbf16>
    %cst_27 = arith.constant dense<0.000000e+00> : vector<8x8xf32>
    %77 = tpu.matmul %75, %76, %cst_27 {dimension_numbers = #tpu.dot_dimension_numbers<[1], [0], [0], [1], [0, 0, 1, 1], [], []>} : vector<8x8xbf16>, vector<8x8xbf16>, vector<8x8xf32> -> vector<8x8xf32>
    %78 = vector.extract_strided_slice %23 {offsets = [0, 24], sizes = [8, 8], strides = [1, 1]} : vector<8x96xf32> to vector<8x8xf32>
    %79 = vector.extract_strided_slice %23 {offsets = [0, 56], sizes = [8, 8], strides = [1, 1]} : vector<8x96xf32> to vector<8x8xf32>
    %80 = vector.extract_strided_slice %23 {offsets = [0, 88], sizes = [8, 8], strides = [1, 1]} : vector<8x96xf32> to vector<8x8xf32>
    %81 = arith.truncf %78 : vector<8x8xf32> to vector<8x8xbf16>
    %82 = arith.truncf %79 : vector<8x8xf32> to vector<8x8xbf16>
    %cst_28 = arith.constant dense<0.000000e+00> : vector<8x8xf32>
    %83 = tpu.matmul %81, %82, %cst_28 {dimension_numbers = #tpu.dot_dimension_numbers<[1], [1], [0], [0], [0, 0, 1, 0], [], []>} : vector<8x8xbf16>, vector<8x8xbf16>, vector<8x8xf32> -> vector<8x8xf32>
    %cst_29 = arith.constant dense<0xFF800000> : vector<8xf32>
    %84 = vector.multi_reduction <maximumf>, %83, %cst_29 [1] : vector<8x8xf32> to vector<8xf32>
    %85 = vector.shape_cast %84 : vector<8xf32> to vector<8x1xf32>
    %86 = vector.broadcast %85 : vector<8x1xf32> to vector<8x8xf32>
    %87 = arith.subf %83, %86 : vector<8x8xf32>
    %88 = math.exp %87 : vector<8x8xf32>
    %cst_30 = arith.constant dense<0.000000e+00> : vector<8xf32>
    %89 = vector.multi_reduction <add>, %88, %cst_30 [1] : vector<8x8xf32> to vector<8xf32>
    %90 = vector.shape_cast %89 : vector<8xf32> to vector<8x1xf32>
    %91 = vector.broadcast %90 : vector<8x1xf32> to vector<8x8xf32>
    %92 = arith.divf %88, %91 : vector<8x8xf32>
    %93 = arith.truncf %92 : vector<8x8xf32> to vector<8x8xbf16>
    %94 = arith.truncf %80 : vector<8x8xf32> to vector<8x8xbf16>
    %cst_31 = arith.constant dense<0.000000e+00> : vector<8x8xf32>
    %95 = tpu.matmul %93, %94, %cst_31 {dimension_numbers = #tpu.dot_dimension_numbers<[1], [0], [0], [1], [0, 0, 1, 1], [], []>} : vector<8x8xbf16>, vector<8x8xbf16>, vector<8x8xf32> -> vector<8x8xf32>
    %96 = tpu.concatenate %41, %59, %77, %95 in 1 : vector<8x8xf32>, vector<8x8xf32>, vector<8x8xf32>, vector<8x8xf32> -> vector<8x32xf32>
    %97 = vector.extract_strided_slice %22 {offsets = [8, 0], sizes = [8, 96], strides = [1, 1]} : vector<16x96xf32> to vector<8x96xf32>
    %98 = vector.extract_strided_slice %97 {offsets = [0, 0], sizes = [8, 8], strides = [1, 1]} : vector<8x96xf32> to vector<8x8xf32>
    %99 = vector.extract_strided_slice %97 {offsets = [0, 32], sizes = [8, 8], strides = [1, 1]} : vector<8x96xf32> to vector<8x8xf32>
    %100 = vector.extract_strided_slice %97 {offsets = [0, 64], sizes = [8, 8], strides = [1, 1]} : vector<8x96xf32> to vector<8x8xf32>
    %101 = arith.truncf %98 : vector<8x8xf32> to vector<8x8xbf16>
    %102 = arith.truncf %99 : vector<8x8xf32> to vector<8x8xbf16>
    %cst_32 = arith.constant dense<0.000000e+00> : vector<8x8xf32>
    %103 = tpu.matmul %101, %102, %cst_32 {dimension_numbers = #tpu.dot_dimension_numbers<[1], [1], [0], [0], [0, 0, 1, 0], [], []>} : vector<8x8xbf16>, vector<8x8xbf16>, vector<8x8xf32> -> vector<8x8xf32>
    %cst_33 = arith.constant dense<0xFF800000> : vector<8xf32>
    %104 = vector.multi_reduction <maximumf>, %103, %cst_33 [1] : vector<8x8xf32> to vector<8xf32>
    %105 = vector.shape_cast %104 : vector<8xf32> to vector<8x1xf32>
    %106 = vector.broadcast %105 : vector<8x1xf32> to vector<8x8xf32>
    %107 = arith.subf %103, %106 : vector<8x8xf32>
    %108 = math.exp %107 : vector<8x8xf32>
    %cst_34 = arith.constant dense<0.000000e+00> : vector<8xf32>
    %109 = vector.multi_reduction <add>, %108, %cst_34 [1] : vector<8x8xf32> to vector<8xf32>
    %110 = vector.shape_cast %109 : vector<8xf32> to vector<8x1xf32>
    %111 = vector.broadcast %110 : vector<8x1xf32> to vector<8x8xf32>
    %112 = arith.divf %108, %111 : vector<8x8xf32>
    %113 = arith.truncf %112 : vector<8x8xf32> to vector<8x8xbf16>
    %114 = arith.truncf %100 : vector<8x8xf32> to vector<8x8xbf16>
    %cst_35 = arith.constant dense<0.000000e+00> : vector<8x8xf32>
    %115 = tpu.matmul %113, %114, %cst_35 {dimension_numbers = #tpu.dot_dimension_numbers<[1], [0], [0], [1], [0, 0, 1, 1], [], []>} : vector<8x8xbf16>, vector<8x8xbf16>, vector<8x8xf32> -> vector<8x8xf32>
    %116 = vector.extract_strided_slice %97 {offsets = [0, 8], sizes = [8, 8], strides = [1, 1]} : vector<8x96xf32> to vector<8x8xf32>
    %117 = vector.extract_strided_slice %97 {offsets = [0, 40], sizes = [8, 8], strides = [1, 1]} : vector<8x96xf32> to vector<8x8xf32>
    %118 = vector.extract_strided_slice %97 {offsets = [0, 72], sizes = [8, 8], strides = [1, 1]} : vector<8x96xf32> to vector<8x8xf32>
    %119 = arith.truncf %116 : vector<8x8xf32> to vector<8x8xbf16>
    %120 = arith.truncf %117 : vector<8x8xf32> to vector<8x8xbf16>
    %cst_36 = arith.constant dense<0.000000e+00> : vector<8x8xf32>
    %121 = tpu.matmul %119, %120, %cst_36 {dimension_numbers = #tpu.dot_dimension_numbers<[1], [1], [0], [0], [0, 0, 1, 0], [], []>} : vector<8x8xbf16>, vector<8x8xbf16>, vector<8x8xf32> -> vector<8x8xf32>
    %cst_37 = arith.constant dense<0xFF800000> : vector<8xf32>
    %122 = vector.multi_reduction <maximumf>, %121, %cst_37 [1] : vector<8x8xf32> to vector<8xf32>
    %123 = vector.shape_cast %122 : vector<8xf32> to vector<8x1xf32>
    %124 = vector.broadcast %123 : vector<8x1xf32> to vector<8x8xf32>
    %125 = arith.subf %121, %124 : vector<8x8xf32>
    %126 = math.exp %125 : vector<8x8xf32>
    %cst_38 = arith.constant dense<0.000000e+00> : vector<8xf32>
    %127 = vector.multi_reduction <add>, %126, %cst_38 [1] : vector<8x8xf32> to vector<8xf32>
    %128 = vector.shape_cast %127 : vector<8xf32> to vector<8x1xf32>
    %129 = vector.broadcast %128 : vector<8x1xf32> to vector<8x8xf32>
    %130 = arith.divf %126, %129 : vector<8x8xf32>
    %131 = arith.truncf %130 : vector<8x8xf32> to vector<8x8xbf16>
    %132 = arith.truncf %118 : vector<8x8xf32> to vector<8x8xbf16>
    %cst_39 = arith.constant dense<0.000000e+00> : vector<8x8xf32>
    %133 = tpu.matmul %131, %132, %cst_39 {dimension_numbers = #tpu.dot_dimension_numbers<[1], [0], [0], [1], [0, 0, 1, 1], [], []>} : vector<8x8xbf16>, vector<8x8xbf16>, vector<8x8xf32> -> vector<8x8xf32>
    %134 = vector.extract_strided_slice %97 {offsets = [0, 16], sizes = [8, 8], strides = [1, 1]} : vector<8x96xf32> to vector<8x8xf32>
    %135 = vector.extract_strided_slice %97 {offsets = [0, 48], sizes = [8, 8], strides = [1, 1]} : vector<8x96xf32> to vector<8x8xf32>
    %136 = vector.extract_strided_slice %97 {offsets = [0, 80], sizes = [8, 8], strides = [1, 1]} : vector<8x96xf32> to vector<8x8xf32>
    %137 = arith.truncf %134 : vector<8x8xf32> to vector<8x8xbf16>
    %138 = arith.truncf %135 : vector<8x8xf32> to vector<8x8xbf16>
    %cst_40 = arith.constant dense<0.000000e+00> : vector<8x8xf32>
    %139 = tpu.matmul %137, %138, %cst_40 {dimension_numbers = #tpu.dot_dimension_numbers<[1], [1], [0], [0], [0, 0, 1, 0], [], []>} : vector<8x8xbf16>, vector<8x8xbf16>, vector<8x8xf32> -> vector<8x8xf32>
    %cst_41 = arith.constant dense<0xFF800000> : vector<8xf32>
    %140 = vector.multi_reduction <maximumf>, %139, %cst_41 [1] : vector<8x8xf32> to vector<8xf32>
    %141 = vector.shape_cast %140 : vector<8xf32> to vector<8x1xf32>
    %142 = vector.broadcast %141 : vector<8x1xf32> to vector<8x8xf32>
    %143 = arith.subf %139, %142 : vector<8x8xf32>
    %144 = math.exp %143 : vector<8x8xf32>
    %cst_42 = arith.constant dense<0.000000e+00> : vector<8xf32>
    %145 = vector.multi_reduction <add>, %144, %cst_42 [1] : vector<8x8xf32> to vector<8xf32>
    %146 = vector.shape_cast %145 : vector<8xf32> to vector<8x1xf32>
    %147 = vector.broadcast %146 : vector<8x1xf32> to vector<8x8xf32>
    %148 = arith.divf %144, %147 : vector<8x8xf32>
    %149 = arith.truncf %148 : vector<8x8xf32> to vector<8x8xbf16>
    %150 = arith.truncf %136 : vector<8x8xf32> to vector<8x8xbf16>
    %cst_43 = arith.constant dense<0.000000e+00> : vector<8x8xf32>
    %151 = tpu.matmul %149, %150, %cst_43 {dimension_numbers = #tpu.dot_dimension_numbers<[1], [0], [0], [1], [0, 0, 1, 1], [], []>} : vector<8x8xbf16>, vector<8x8xbf16>, vector<8x8xf32> -> vector<8x8xf32>
    %152 = vector.extract_strided_slice %97 {offsets = [0, 24], sizes = [8, 8], strides = [1, 1]} : vector<8x96xf32> to vector<8x8xf32>
    %153 = vector.extract_strided_slice %97 {offsets = [0, 56], sizes = [8, 8], strides = [1, 1]} : vector<8x96xf32> to vector<8x8xf32>
    %154 = vector.extract_strided_slice %97 {offsets = [0, 88], sizes = [8, 8], strides = [1, 1]} : vector<8x96xf32> to vector<8x8xf32>
    %155 = arith.truncf %152 : vector<8x8xf32> to vector<8x8xbf16>
    %156 = arith.truncf %153 : vector<8x8xf32> to vector<8x8xbf16>
    %cst_44 = arith.constant dense<0.000000e+00> : vector<8x8xf32>
    %157 = tpu.matmul %155, %156, %cst_44 {dimension_numbers = #tpu.dot_dimension_numbers<[1], [1], [0], [0], [0, 0, 1, 0], [], []>} : vector<8x8xbf16>, vector<8x8xbf16>, vector<8x8xf32> -> vector<8x8xf32>
    %cst_45 = arith.constant dense<0xFF800000> : vector<8xf32>
    %158 = vector.multi_reduction <maximumf>, %157, %cst_45 [1] : vector<8x8xf32> to vector<8xf32>
    %159 = vector.shape_cast %158 : vector<8xf32> to vector<8x1xf32>
    %160 = vector.broadcast %159 : vector<8x1xf32> to vector<8x8xf32>
    %161 = arith.subf %157, %160 : vector<8x8xf32>
    %162 = math.exp %161 : vector<8x8xf32>
    %cst_46 = arith.constant dense<0.000000e+00> : vector<8xf32>
    %163 = vector.multi_reduction <add>, %162, %cst_46 [1] : vector<8x8xf32> to vector<8xf32>
    %164 = vector.shape_cast %163 : vector<8xf32> to vector<8x1xf32>
    %165 = vector.broadcast %164 : vector<8x1xf32> to vector<8x8xf32>
    %166 = arith.divf %162, %165 : vector<8x8xf32>
    %167 = arith.truncf %166 : vector<8x8xf32> to vector<8x8xbf16>
    %168 = arith.truncf %154 : vector<8x8xf32> to vector<8x8xbf16>
    %cst_47 = arith.constant dense<0.000000e+00> : vector<8x8xf32>
    %169 = tpu.matmul %167, %168, %cst_47 {dimension_numbers = #tpu.dot_dimension_numbers<[1], [0], [0], [1], [0, 0, 1, 1], [], []>} : vector<8x8xbf16>, vector<8x8xbf16>, vector<8x8xf32> -> vector<8x8xf32>
    %170 = tpu.concatenate %115, %133, %151, %169 in 1 : vector<8x8xf32>, vector<8x8xf32>, vector<8x8xf32>, vector<8x8xf32> -> vector<8x32xf32>
    %171 = tpu.concatenate %96, %170 in 0 : vector<8x32xf32>, vector<8x32xf32> -> vector<16x32xf32>
    %172 = arith.truncf %171 : vector<16x32xf32> to vector<16x32xbf16>
    %cst_48 = arith.constant dense<0.000000e+00> : vector<16x32xf32>
    %173 = tpu.matmul %172, %4, %cst_48 {dimension_numbers = #tpu.dot_dimension_numbers<[1], [0], [0], [1], [0, 0, 1, 1], [], []>} : vector<16x32xbf16>, vector<32x32xbf16>, vector<16x32xf32> -> vector<16x32xf32>
    %174 = arith.addf %0, %173 : vector<16x32xf32>
    %175 = vector.broadcast %13 : vector<1x32xf32> to vector<16x32xf32>
    %176 = arith.addf %174, %175 : vector<16x32xf32>
    %cst_49 = arith.constant dense<0.000000e+00> : vector<32xf32>
    %177 = vector.multi_reduction <add>, %176, %cst_49 [0] : vector<16x32xf32> to vector<32xf32>
    %178 = vector.shape_cast %177 : vector<32xf32> to vector<1x32xf32>
    %cst_50 = arith.constant 6.250000e-02 : f32
    %179 = vector.broadcast %cst_50 : f32 to vector<1x32xf32>
    %180 = arith.mulf %178, %179 : vector<1x32xf32>
    %181 = arith.mulf %176, %176 : vector<16x32xf32>
    %cst_51 = arith.constant dense<0.000000e+00> : vector<32xf32>
    %182 = vector.multi_reduction <add>, %181, %cst_51 [0] : vector<16x32xf32> to vector<32xf32>
    %183 = vector.shape_cast %182 : vector<32xf32> to vector<1x32xf32>
    %cst_52 = arith.constant 6.250000e-02 : f32
    %184 = vector.broadcast %cst_52 : f32 to vector<1x32xf32>
    %185 = arith.mulf %183, %184 : vector<1x32xf32>
    %186 = arith.mulf %180, %180 : vector<1x32xf32>
    %187 = arith.subf %185, %186 : vector<1x32xf32>
    %cst_53 = arith.constant 0.000000e+00 : f32
    %188 = vector.broadcast %cst_53 : f32 to vector<1x32xf32>
    %189 = arith.maximumf %187, %188 : vector<1x32xf32>
    %190 = vector.broadcast %180 : vector<1x32xf32> to vector<16x32xf32>
    %191 = arith.subf %176, %190 : vector<16x32xf32>
    %cst_54 = arith.constant 9.99999974E-6 : f32
    %192 = vector.broadcast %cst_54 : f32 to vector<1x32xf32>
    %193 = arith.addf %189, %192 : vector<1x32xf32>
    %194 = math.rsqrt %193 : vector<1x32xf32>
    %195 = arith.mulf %194, %14 : vector<1x32xf32>
    %196 = vector.broadcast %195 : vector<1x32xf32> to vector<16x32xf32>
    %197 = arith.mulf %191, %196 : vector<16x32xf32>
    %198 = vector.broadcast %15 : vector<1x32xf32> to vector<16x32xf32>
    %199 = arith.addf %197, %198 : vector<16x32xf32>
    %200 = arith.truncf %199 : vector<16x32xf32> to vector<16x32xbf16>
    %cst_55 = arith.constant dense<0.000000e+00> : vector<16x64xf32>
    %201 = tpu.matmul %200, %6, %cst_55 {dimension_numbers = #tpu.dot_dimension_numbers<[1], [0], [0], [1], [0, 0, 1, 1], [], []>} : vector<16x32xbf16>, vector<32x64xbf16>, vector<16x64xf32> -> vector<16x64xf32>
    %202 = vector.broadcast %12 : vector<1x64xf32> to vector<16x64xf32>
    %203 = arith.addf %201, %202 : vector<16x64xf32>
    %cst_56 = arith.constant 5.000000e-01 : f32
    %204 = vector.broadcast %cst_56 : f32 to vector<16x64xf32>
    %205 = arith.mulf %204, %203 : vector<16x64xf32>
    %cst_57 = arith.constant 4.471500e-02 : f32
    %206 = vector.broadcast %cst_57 : f32 to vector<16x64xf32>
    %207 = arith.mulf %206, %203 : vector<16x64xf32>
    %208 = arith.mulf %207, %203 : vector<16x64xf32>
    %209 = arith.mulf %208, %203 : vector<16x64xf32>
    %210 = arith.addf %203, %209 : vector<16x64xf32>
    %cst_58 = arith.constant 0.797884583 : f32
    %211 = vector.broadcast %cst_58 : f32 to vector<16x64xf32>
    %212 = arith.mulf %211, %210 : vector<16x64xf32>
    %213 = math.tanh %212 : vector<16x64xf32>
    %cst_59 = arith.constant 1.000000e+00 : f32
    %214 = vector.broadcast %cst_59 : f32 to vector<16x64xf32>
    %215 = arith.addf %214, %213 : vector<16x64xf32>
    %216 = arith.mulf %205, %215 : vector<16x64xf32>
    %217 = arith.truncf %216 : vector<16x64xf32> to vector<16x64xbf16>
    %cst_60 = arith.constant dense<0.000000e+00> : vector<16x32xf32>
    %218 = tpu.matmul %217, %8, %cst_60 {dimension_numbers = #tpu.dot_dimension_numbers<[1], [0], [0], [1], [0, 0, 1, 1], [], []>} : vector<16x64xbf16>, vector<64x32xbf16>, vector<16x32xf32> -> vector<16x32xf32>
    %219 = arith.addf %199, %218 : vector<16x32xf32>
    %220 = vector.broadcast %16 : vector<1x32xf32> to vector<16x32xf32>
    %221 = arith.addf %219, %220 : vector<16x32xf32>
    %cst_61 = arith.constant dense<0.000000e+00> : vector<32xf32>
    %222 = vector.multi_reduction <add>, %221, %cst_61 [0] : vector<16x32xf32> to vector<32xf32>
    %223 = vector.shape_cast %222 : vector<32xf32> to vector<1x32xf32>
    %cst_62 = arith.constant 6.250000e-02 : f32
    %224 = vector.broadcast %cst_62 : f32 to vector<1x32xf32>
    %225 = arith.mulf %223, %224 : vector<1x32xf32>
    %226 = arith.mulf %221, %221 : vector<16x32xf32>
    %cst_63 = arith.constant dense<0.000000e+00> : vector<32xf32>
    %227 = vector.multi_reduction <add>, %226, %cst_63 [0] : vector<16x32xf32> to vector<32xf32>
    %228 = vector.shape_cast %227 : vector<32xf32> to vector<1x32xf32>
    %cst_64 = arith.constant 6.250000e-02 : f32
    %229 = vector.broadcast %cst_64 : f32 to vector<1x32xf32>
    %230 = arith.mulf %228, %229 : vector<1x32xf32>
    %231 = arith.mulf %225, %225 : vector<1x32xf32>
    %232 = arith.subf %230, %231 : vector<1x32xf32>
    %cst_65 = arith.constant 0.000000e+00 : f32
    %233 = vector.broadcast %cst_65 : f32 to vector<1x32xf32>
    %234 = arith.maximumf %232, %233 : vector<1x32xf32>
    %235 = vector.broadcast %225 : vector<1x32xf32> to vector<16x32xf32>
    %236 = arith.subf %221, %235 : vector<16x32xf32>
    %cst_66 = arith.constant 9.99999974E-6 : f32
    %237 = vector.broadcast %cst_66 : f32 to vector<1x32xf32>
    %238 = arith.addf %234, %237 : vector<1x32xf32>
    %239 = math.rsqrt %238 : vector<1x32xf32>
    %240 = arith.mulf %239, %17 : vector<1x32xf32>
    %241 = vector.broadcast %240 : vector<1x32xf32> to vector<16x32xf32>
    %242 = arith.mulf %236, %241 : vector<16x32xf32>
    %243 = vector.broadcast %18 : vector<1x32xf32> to vector<16x32xf32>
    %244 = arith.addf %242, %243 : vector<16x32xf32>
    %c1 = arith.constant 1 : index
    %c0_67 = arith.constant 0 : index
    %c0_68 = arith.constant 0 : index
    %245 = vector.load %arg1[%c1, %c0_67, %c0_68] : memref<2x32x96xbf16, #tpu.memory_space<vmem>>, vector<1x32x96xbf16>
    %246 = vector.shape_cast %245 : vector<1x32x96xbf16> to vector<32x96xbf16>
    %c1_69 = arith.constant 1 : index
    %c0_70 = arith.constant 0 : index
    %c0_71 = arith.constant 0 : index
    %247 = vector.load %arg2[%c1_69, %c0_70, %c0_71] : memref<2x32x32xbf16, #tpu.memory_space<vmem>>, vector<1x32x32xbf16>
    %248 = vector.shape_cast %247 : vector<1x32x32xbf16> to vector<32x32xbf16>
    %c1_72 = arith.constant 1 : index
    %c0_73 = arith.constant 0 : index
    %c0_74 = arith.constant 0 : index
    %249 = vector.load %arg3[%c1_72, %c0_73, %c0_74] : memref<2x32x64xbf16, #tpu.memory_space<vmem>>, vector<1x32x64xbf16>
    %250 = vector.shape_cast %249 : vector<1x32x64xbf16> to vector<32x64xbf16>
    %c1_75 = arith.constant 1 : index
    %c0_76 = arith.constant 0 : index
    %c0_77 = arith.constant 0 : index
    %251 = vector.load %arg4[%c1_75, %c0_76, %c0_77] : memref<2x64x32xbf16, #tpu.memory_space<vmem>>, vector<1x64x32xbf16>
    %252 = vector.shape_cast %251 : vector<1x64x32xbf16> to vector<64x32xbf16>
    %c1_78 = arith.constant 1 : index
    %c0_79 = arith.constant 0 : index
    %c0_80 = arith.constant 0 : index
    %253 = vector.load %arg5[%c1_78, %c0_79, %c0_80] : memref<2x8x96xf32, #tpu.memory_space<vmem>>, vector<1x8x96xf32>
    %254 = vector.shape_cast %253 : vector<1x8x96xf32> to vector<8x96xf32>
    %255 = vector.extract_strided_slice %254 {offsets = [0, 0], sizes = [1, 96], strides = [1, 1]} : vector<8x96xf32> to vector<1x96xf32>
    %256 = vector.extract_strided_slice %254 {offsets = [1, 0], sizes = [1, 64], strides = [1, 1]} : vector<8x96xf32> to vector<1x64xf32>
    %257 = vector.extract_strided_slice %254 {offsets = [2, 0], sizes = [1, 32], strides = [1, 1]} : vector<8x96xf32> to vector<1x32xf32>
    %258 = vector.extract_strided_slice %254 {offsets = [3, 0], sizes = [1, 32], strides = [1, 1]} : vector<8x96xf32> to vector<1x32xf32>
    %259 = vector.extract_strided_slice %254 {offsets = [4, 0], sizes = [1, 32], strides = [1, 1]} : vector<8x96xf32> to vector<1x32xf32>
    %260 = vector.extract_strided_slice %254 {offsets = [5, 0], sizes = [1, 32], strides = [1, 1]} : vector<8x96xf32> to vector<1x32xf32>
    %261 = vector.extract_strided_slice %254 {offsets = [6, 0], sizes = [1, 32], strides = [1, 1]} : vector<8x96xf32> to vector<1x32xf32>
    %262 = vector.extract_strided_slice %254 {offsets = [7, 0], sizes = [1, 32], strides = [1, 1]} : vector<8x96xf32> to vector<1x32xf32>
    %263 = arith.truncf %244 : vector<16x32xf32> to vector<16x32xbf16>
    %cst_81 = arith.constant dense<0.000000e+00> : vector<16x96xf32>
    %264 = tpu.matmul %263, %246, %cst_81 {dimension_numbers = #tpu.dot_dimension_numbers<[1], [0], [0], [1], [0, 0, 1, 1], [], []>} : vector<16x32xbf16>, vector<32x96xbf16>, vector<16x96xf32> -> vector<16x96xf32>
    %265 = vector.broadcast %255 : vector<1x96xf32> to vector<16x96xf32>
    %266 = arith.addf %264, %265 : vector<16x96xf32>
    %267 = vector.extract_strided_slice %266 {offsets = [0, 0], sizes = [8, 96], strides = [1, 1]} : vector<16x96xf32> to vector<8x96xf32>
    %268 = vector.extract_strided_slice %267 {offsets = [0, 0], sizes = [8, 8], strides = [1, 1]} : vector<8x96xf32> to vector<8x8xf32>
    %269 = vector.extract_strided_slice %267 {offsets = [0, 32], sizes = [8, 8], strides = [1, 1]} : vector<8x96xf32> to vector<8x8xf32>
    %270 = vector.extract_strided_slice %267 {offsets = [0, 64], sizes = [8, 8], strides = [1, 1]} : vector<8x96xf32> to vector<8x8xf32>
    %271 = arith.truncf %268 : vector<8x8xf32> to vector<8x8xbf16>
    %272 = arith.truncf %269 : vector<8x8xf32> to vector<8x8xbf16>
    %cst_82 = arith.constant dense<0.000000e+00> : vector<8x8xf32>
    %273 = tpu.matmul %271, %272, %cst_82 {dimension_numbers = #tpu.dot_dimension_numbers<[1], [1], [0], [0], [0, 0, 1, 0], [], []>} : vector<8x8xbf16>, vector<8x8xbf16>, vector<8x8xf32> -> vector<8x8xf32>
    %cst_83 = arith.constant dense<0xFF800000> : vector<8xf32>
    %274 = vector.multi_reduction <maximumf>, %273, %cst_83 [1] : vector<8x8xf32> to vector<8xf32>
    %275 = vector.shape_cast %274 : vector<8xf32> to vector<8x1xf32>
    %276 = vector.broadcast %275 : vector<8x1xf32> to vector<8x8xf32>
    %277 = arith.subf %273, %276 : vector<8x8xf32>
    %278 = math.exp %277 : vector<8x8xf32>
    %cst_84 = arith.constant dense<0.000000e+00> : vector<8xf32>
    %279 = vector.multi_reduction <add>, %278, %cst_84 [1] : vector<8x8xf32> to vector<8xf32>
    %280 = vector.shape_cast %279 : vector<8xf32> to vector<8x1xf32>
    %281 = vector.broadcast %280 : vector<8x1xf32> to vector<8x8xf32>
    %282 = arith.divf %278, %281 : vector<8x8xf32>
    %283 = arith.truncf %282 : vector<8x8xf32> to vector<8x8xbf16>
    %284 = arith.truncf %270 : vector<8x8xf32> to vector<8x8xbf16>
    %cst_85 = arith.constant dense<0.000000e+00> : vector<8x8xf32>
    %285 = tpu.matmul %283, %284, %cst_85 {dimension_numbers = #tpu.dot_dimension_numbers<[1], [0], [0], [1], [0, 0, 1, 1], [], []>} : vector<8x8xbf16>, vector<8x8xbf16>, vector<8x8xf32> -> vector<8x8xf32>
    %286 = vector.extract_strided_slice %267 {offsets = [0, 8], sizes = [8, 8], strides = [1, 1]} : vector<8x96xf32> to vector<8x8xf32>
    %287 = vector.extract_strided_slice %267 {offsets = [0, 40], sizes = [8, 8], strides = [1, 1]} : vector<8x96xf32> to vector<8x8xf32>
    %288 = vector.extract_strided_slice %267 {offsets = [0, 72], sizes = [8, 8], strides = [1, 1]} : vector<8x96xf32> to vector<8x8xf32>
    %289 = arith.truncf %286 : vector<8x8xf32> to vector<8x8xbf16>
    %290 = arith.truncf %287 : vector<8x8xf32> to vector<8x8xbf16>
    %cst_86 = arith.constant dense<0.000000e+00> : vector<8x8xf32>
    %291 = tpu.matmul %289, %290, %cst_86 {dimension_numbers = #tpu.dot_dimension_numbers<[1], [1], [0], [0], [0, 0, 1, 0], [], []>} : vector<8x8xbf16>, vector<8x8xbf16>, vector<8x8xf32> -> vector<8x8xf32>
    %cst_87 = arith.constant dense<0xFF800000> : vector<8xf32>
    %292 = vector.multi_reduction <maximumf>, %291, %cst_87 [1] : vector<8x8xf32> to vector<8xf32>
    %293 = vector.shape_cast %292 : vector<8xf32> to vector<8x1xf32>
    %294 = vector.broadcast %293 : vector<8x1xf32> to vector<8x8xf32>
    %295 = arith.subf %291, %294 : vector<8x8xf32>
    %296 = math.exp %295 : vector<8x8xf32>
    %cst_88 = arith.constant dense<0.000000e+00> : vector<8xf32>
    %297 = vector.multi_reduction <add>, %296, %cst_88 [1] : vector<8x8xf32> to vector<8xf32>
    %298 = vector.shape_cast %297 : vector<8xf32> to vector<8x1xf32>
    %299 = vector.broadcast %298 : vector<8x1xf32> to vector<8x8xf32>
    %300 = arith.divf %296, %299 : vector<8x8xf32>
    %301 = arith.truncf %300 : vector<8x8xf32> to vector<8x8xbf16>
    %302 = arith.truncf %288 : vector<8x8xf32> to vector<8x8xbf16>
    %cst_89 = arith.constant dense<0.000000e+00> : vector<8x8xf32>
    %303 = tpu.matmul %301, %302, %cst_89 {dimension_numbers = #tpu.dot_dimension_numbers<[1], [0], [0], [1], [0, 0, 1, 1], [], []>} : vector<8x8xbf16>, vector<8x8xbf16>, vector<8x8xf32> -> vector<8x8xf32>
    %304 = vector.extract_strided_slice %267 {offsets = [0, 16], sizes = [8, 8], strides = [1, 1]} : vector<8x96xf32> to vector<8x8xf32>
    %305 = vector.extract_strided_slice %267 {offsets = [0, 48], sizes = [8, 8], strides = [1, 1]} : vector<8x96xf32> to vector<8x8xf32>
    %306 = vector.extract_strided_slice %267 {offsets = [0, 80], sizes = [8, 8], strides = [1, 1]} : vector<8x96xf32> to vector<8x8xf32>
    %307 = arith.truncf %304 : vector<8x8xf32> to vector<8x8xbf16>
    %308 = arith.truncf %305 : vector<8x8xf32> to vector<8x8xbf16>
    %cst_90 = arith.constant dense<0.000000e+00> : vector<8x8xf32>
    %309 = tpu.matmul %307, %308, %cst_90 {dimension_numbers = #tpu.dot_dimension_numbers<[1], [1], [0], [0], [0, 0, 1, 0], [], []>} : vector<8x8xbf16>, vector<8x8xbf16>, vector<8x8xf32> -> vector<8x8xf32>
    %cst_91 = arith.constant dense<0xFF800000> : vector<8xf32>
    %310 = vector.multi_reduction <maximumf>, %309, %cst_91 [1] : vector<8x8xf32> to vector<8xf32>
    %311 = vector.shape_cast %310 : vector<8xf32> to vector<8x1xf32>
    %312 = vector.broadcast %311 : vector<8x1xf32> to vector<8x8xf32>
    %313 = arith.subf %309, %312 : vector<8x8xf32>
    %314 = math.exp %313 : vector<8x8xf32>
    %cst_92 = arith.constant dense<0.000000e+00> : vector<8xf32>
    %315 = vector.multi_reduction <add>, %314, %cst_92 [1] : vector<8x8xf32> to vector<8xf32>
    %316 = vector.shape_cast %315 : vector<8xf32> to vector<8x1xf32>
    %317 = vector.broadcast %316 : vector<8x1xf32> to vector<8x8xf32>
    %318 = arith.divf %314, %317 : vector<8x8xf32>
    %319 = arith.truncf %318 : vector<8x8xf32> to vector<8x8xbf16>
    %320 = arith.truncf %306 : vector<8x8xf32> to vector<8x8xbf16>
    %cst_93 = arith.constant dense<0.000000e+00> : vector<8x8xf32>
    %321 = tpu.matmul %319, %320, %cst_93 {dimension_numbers = #tpu.dot_dimension_numbers<[1], [0], [0], [1], [0, 0, 1, 1], [], []>} : vector<8x8xbf16>, vector<8x8xbf16>, vector<8x8xf32> -> vector<8x8xf32>
    %322 = vector.extract_strided_slice %267 {offsets = [0, 24], sizes = [8, 8], strides = [1, 1]} : vector<8x96xf32> to vector<8x8xf32>
    %323 = vector.extract_strided_slice %267 {offsets = [0, 56], sizes = [8, 8], strides = [1, 1]} : vector<8x96xf32> to vector<8x8xf32>
    %324 = vector.extract_strided_slice %267 {offsets = [0, 88], sizes = [8, 8], strides = [1, 1]} : vector<8x96xf32> to vector<8x8xf32>
    %325 = arith.truncf %322 : vector<8x8xf32> to vector<8x8xbf16>
    %326 = arith.truncf %323 : vector<8x8xf32> to vector<8x8xbf16>
    %cst_94 = arith.constant dense<0.000000e+00> : vector<8x8xf32>
    %327 = tpu.matmul %325, %326, %cst_94 {dimension_numbers = #tpu.dot_dimension_numbers<[1], [1], [0], [0], [0, 0, 1, 0], [], []>} : vector<8x8xbf16>, vector<8x8xbf16>, vector<8x8xf32> -> vector<8x8xf32>
    %cst_95 = arith.constant dense<0xFF800000> : vector<8xf32>
    %328 = vector.multi_reduction <maximumf>, %327, %cst_95 [1] : vector<8x8xf32> to vector<8xf32>
    %329 = vector.shape_cast %328 : vector<8xf32> to vector<8x1xf32>
    %330 = vector.broadcast %329 : vector<8x1xf32> to vector<8x8xf32>
    %331 = arith.subf %327, %330 : vector<8x8xf32>
    %332 = math.exp %331 : vector<8x8xf32>
    %cst_96 = arith.constant dense<0.000000e+00> : vector<8xf32>
    %333 = vector.multi_reduction <add>, %332, %cst_96 [1] : vector<8x8xf32> to vector<8xf32>
    %334 = vector.shape_cast %333 : vector<8xf32> to vector<8x1xf32>
    %335 = vector.broadcast %334 : vector<8x1xf32> to vector<8x8xf32>
    %336 = arith.divf %332, %335 : vector<8x8xf32>
    %337 = arith.truncf %336 : vector<8x8xf32> to vector<8x8xbf16>
    %338 = arith.truncf %324 : vector<8x8xf32> to vector<8x8xbf16>
    %cst_97 = arith.constant dense<0.000000e+00> : vector<8x8xf32>
    %339 = tpu.matmul %337, %338, %cst_97 {dimension_numbers = #tpu.dot_dimension_numbers<[1], [0], [0], [1], [0, 0, 1, 1], [], []>} : vector<8x8xbf16>, vector<8x8xbf16>, vector<8x8xf32> -> vector<8x8xf32>
    %340 = tpu.concatenate %285, %303, %321, %339 in 1 : vector<8x8xf32>, vector<8x8xf32>, vector<8x8xf32>, vector<8x8xf32> -> vector<8x32xf32>
    %341 = vector.extract_strided_slice %266 {offsets = [8, 0], sizes = [8, 96], strides = [1, 1]} : vector<16x96xf32> to vector<8x96xf32>
    %342 = vector.extract_strided_slice %341 {offsets = [0, 0], sizes = [8, 8], strides = [1, 1]} : vector<8x96xf32> to vector<8x8xf32>
    %343 = vector.extract_strided_slice %341 {offsets = [0, 32], sizes = [8, 8], strides = [1, 1]} : vector<8x96xf32> to vector<8x8xf32>
    %344 = vector.extract_strided_slice %341 {offsets = [0, 64], sizes = [8, 8], strides = [1, 1]} : vector<8x96xf32> to vector<8x8xf32>
    %345 = arith.truncf %342 : vector<8x8xf32> to vector<8x8xbf16>
    %346 = arith.truncf %343 : vector<8x8xf32> to vector<8x8xbf16>
    %cst_98 = arith.constant dense<0.000000e+00> : vector<8x8xf32>
    %347 = tpu.matmul %345, %346, %cst_98 {dimension_numbers = #tpu.dot_dimension_numbers<[1], [1], [0], [0], [0, 0, 1, 0], [], []>} : vector<8x8xbf16>, vector<8x8xbf16>, vector<8x8xf32> -> vector<8x8xf32>
    %cst_99 = arith.constant dense<0xFF800000> : vector<8xf32>
    %348 = vector.multi_reduction <maximumf>, %347, %cst_99 [1] : vector<8x8xf32> to vector<8xf32>
    %349 = vector.shape_cast %348 : vector<8xf32> to vector<8x1xf32>
    %350 = vector.broadcast %349 : vector<8x1xf32> to vector<8x8xf32>
    %351 = arith.subf %347, %350 : vector<8x8xf32>
    %352 = math.exp %351 : vector<8x8xf32>
    %cst_100 = arith.constant dense<0.000000e+00> : vector<8xf32>
    %353 = vector.multi_reduction <add>, %352, %cst_100 [1] : vector<8x8xf32> to vector<8xf32>
    %354 = vector.shape_cast %353 : vector<8xf32> to vector<8x1xf32>
    %355 = vector.broadcast %354 : vector<8x1xf32> to vector<8x8xf32>
    %356 = arith.divf %352, %355 : vector<8x8xf32>
    %357 = arith.truncf %356 : vector<8x8xf32> to vector<8x8xbf16>
    %358 = arith.truncf %344 : vector<8x8xf32> to vector<8x8xbf16>
    %cst_101 = arith.constant dense<0.000000e+00> : vector<8x8xf32>
    %359 = tpu.matmul %357, %358, %cst_101 {dimension_numbers = #tpu.dot_dimension_numbers<[1], [0], [0], [1], [0, 0, 1, 1], [], []>} : vector<8x8xbf16>, vector<8x8xbf16>, vector<8x8xf32> -> vector<8x8xf32>
    %360 = vector.extract_strided_slice %341 {offsets = [0, 8], sizes = [8, 8], strides = [1, 1]} : vector<8x96xf32> to vector<8x8xf32>
    %361 = vector.extract_strided_slice %341 {offsets = [0, 40], sizes = [8, 8], strides = [1, 1]} : vector<8x96xf32> to vector<8x8xf32>
    %362 = vector.extract_strided_slice %341 {offsets = [0, 72], sizes = [8, 8], strides = [1, 1]} : vector<8x96xf32> to vector<8x8xf32>
    %363 = arith.truncf %360 : vector<8x8xf32> to vector<8x8xbf16>
    %364 = arith.truncf %361 : vector<8x8xf32> to vector<8x8xbf16>
    %cst_102 = arith.constant dense<0.000000e+00> : vector<8x8xf32>
    %365 = tpu.matmul %363, %364, %cst_102 {dimension_numbers = #tpu.dot_dimension_numbers<[1], [1], [0], [0], [0, 0, 1, 0], [], []>} : vector<8x8xbf16>, vector<8x8xbf16>, vector<8x8xf32> -> vector<8x8xf32>
    %cst_103 = arith.constant dense<0xFF800000> : vector<8xf32>
    %366 = vector.multi_reduction <maximumf>, %365, %cst_103 [1] : vector<8x8xf32> to vector<8xf32>
    %367 = vector.shape_cast %366 : vector<8xf32> to vector<8x1xf32>
    %368 = vector.broadcast %367 : vector<8x1xf32> to vector<8x8xf32>
    %369 = arith.subf %365, %368 : vector<8x8xf32>
    %370 = math.exp %369 : vector<8x8xf32>
    %cst_104 = arith.constant dense<0.000000e+00> : vector<8xf32>
    %371 = vector.multi_reduction <add>, %370, %cst_104 [1] : vector<8x8xf32> to vector<8xf32>
    %372 = vector.shape_cast %371 : vector<8xf32> to vector<8x1xf32>
    %373 = vector.broadcast %372 : vector<8x1xf32> to vector<8x8xf32>
    %374 = arith.divf %370, %373 : vector<8x8xf32>
    %375 = arith.truncf %374 : vector<8x8xf32> to vector<8x8xbf16>
    %376 = arith.truncf %362 : vector<8x8xf32> to vector<8x8xbf16>
    %cst_105 = arith.constant dense<0.000000e+00> : vector<8x8xf32>
    %377 = tpu.matmul %375, %376, %cst_105 {dimension_numbers = #tpu.dot_dimension_numbers<[1], [0], [0], [1], [0, 0, 1, 1], [], []>} : vector<8x8xbf16>, vector<8x8xbf16>, vector<8x8xf32> -> vector<8x8xf32>
    %378 = vector.extract_strided_slice %341 {offsets = [0, 16], sizes = [8, 8], strides = [1, 1]} : vector<8x96xf32> to vector<8x8xf32>
    %379 = vector.extract_strided_slice %341 {offsets = [0, 48], sizes = [8, 8], strides = [1, 1]} : vector<8x96xf32> to vector<8x8xf32>
    %380 = vector.extract_strided_slice %341 {offsets = [0, 80], sizes = [8, 8], strides = [1, 1]} : vector<8x96xf32> to vector<8x8xf32>
    %381 = arith.truncf %378 : vector<8x8xf32> to vector<8x8xbf16>
    %382 = arith.truncf %379 : vector<8x8xf32> to vector<8x8xbf16>
    %cst_106 = arith.constant dense<0.000000e+00> : vector<8x8xf32>
    %383 = tpu.matmul %381, %382, %cst_106 {dimension_numbers = #tpu.dot_dimension_numbers<[1], [1], [0], [0], [0, 0, 1, 0], [], []>} : vector<8x8xbf16>, vector<8x8xbf16>, vector<8x8xf32> -> vector<8x8xf32>
    %cst_107 = arith.constant dense<0xFF800000> : vector<8xf32>
    %384 = vector.multi_reduction <maximumf>, %383, %cst_107 [1] : vector<8x8xf32> to vector<8xf32>
    %385 = vector.shape_cast %384 : vector<8xf32> to vector<8x1xf32>
    %386 = vector.broadcast %385 : vector<8x1xf32> to vector<8x8xf32>
    %387 = arith.subf %383, %386 : vector<8x8xf32>
    %388 = math.exp %387 : vector<8x8xf32>
    %cst_108 = arith.constant dense<0.000000e+00> : vector<8xf32>
    %389 = vector.multi_reduction <add>, %388, %cst_108 [1] : vector<8x8xf32> to vector<8xf32>
    %390 = vector.shape_cast %389 : vector<8xf32> to vector<8x1xf32>
    %391 = vector.broadcast %390 : vector<8x1xf32> to vector<8x8xf32>
    %392 = arith.divf %388, %391 : vector<8x8xf32>
    %393 = arith.truncf %392 : vector<8x8xf32> to vector<8x8xbf16>
    %394 = arith.truncf %380 : vector<8x8xf32> to vector<8x8xbf16>
    %cst_109 = arith.constant dense<0.000000e+00> : vector<8x8xf32>
    %395 = tpu.matmul %393, %394, %cst_109 {dimension_numbers = #tpu.dot_dimension_numbers<[1], [0], [0], [1], [0, 0, 1, 1], [], []>} : vector<8x8xbf16>, vector<8x8xbf16>, vector<8x8xf32> -> vector<8x8xf32>
    %396 = vector.extract_strided_slice %341 {offsets = [0, 24], sizes = [8, 8], strides = [1, 1]} : vector<8x96xf32> to vector<8x8xf32>
    %397 = vector.extract_strided_slice %341 {offsets = [0, 56], sizes = [8, 8], strides = [1, 1]} : vector<8x96xf32> to vector<8x8xf32>
    %398 = vector.extract_strided_slice %341 {offsets = [0, 88], sizes = [8, 8], strides = [1, 1]} : vector<8x96xf32> to vector<8x8xf32>
    %399 = arith.truncf %396 : vector<8x8xf32> to vector<8x8xbf16>
    %400 = arith.truncf %397 : vector<8x8xf32> to vector<8x8xbf16>
    %cst_110 = arith.constant dense<0.000000e+00> : vector<8x8xf32>
    %401 = tpu.matmul %399, %400, %cst_110 {dimension_numbers = #tpu.dot_dimension_numbers<[1], [1], [0], [0], [0, 0, 1, 0], [], []>} : vector<8x8xbf16>, vector<8x8xbf16>, vector<8x8xf32> -> vector<8x8xf32>
    %cst_111 = arith.constant dense<0xFF800000> : vector<8xf32>
    %402 = vector.multi_reduction <maximumf>, %401, %cst_111 [1] : vector<8x8xf32> to vector<8xf32>
    %403 = vector.shape_cast %402 : vector<8xf32> to vector<8x1xf32>
    %404 = vector.broadcast %403 : vector<8x1xf32> to vector<8x8xf32>
    %405 = arith.subf %401, %404 : vector<8x8xf32>
    %406 = math.exp %405 : vector<8x8xf32>
    %cst_112 = arith.constant dense<0.000000e+00> : vector<8xf32>
    %407 = vector.multi_reduction <add>, %406, %cst_112 [1] : vector<8x8xf32> to vector<8xf32>
    %408 = vector.shape_cast %407 : vector<8xf32> to vector<8x1xf32>
    %409 = vector.broadcast %408 : vector<8x1xf32> to vector<8x8xf32>
    %410 = arith.divf %406, %409 : vector<8x8xf32>
    %411 = arith.truncf %410 : vector<8x8xf32> to vector<8x8xbf16>
    %412 = arith.truncf %398 : vector<8x8xf32> to vector<8x8xbf16>
    %cst_113 = arith.constant dense<0.000000e+00> : vector<8x8xf32>
    %413 = tpu.matmul %411, %412, %cst_113 {dimension_numbers = #tpu.dot_dimension_numbers<[1], [0], [0], [1], [0, 0, 1, 1], [], []>} : vector<8x8xbf16>, vector<8x8xbf16>, vector<8x8xf32> -> vector<8x8xf32>
    %414 = tpu.concatenate %359, %377, %395, %413 in 1 : vector<8x8xf32>, vector<8x8xf32>, vector<8x8xf32>, vector<8x8xf32> -> vector<8x32xf32>
    %415 = tpu.concatenate %340, %414 in 0 : vector<8x32xf32>, vector<8x32xf32> -> vector<16x32xf32>
    %416 = arith.truncf %415 : vector<16x32xf32> to vector<16x32xbf16>
    %cst_114 = arith.constant dense<0.000000e+00> : vector<16x32xf32>
    %417 = tpu.matmul %416, %248, %cst_114 {dimension_numbers = #tpu.dot_dimension_numbers<[1], [0], [0], [1], [0, 0, 1, 1], [], []>} : vector<16x32xbf16>, vector<32x32xbf16>, vector<16x32xf32> -> vector<16x32xf32>
    %418 = arith.addf %244, %417 : vector<16x32xf32>
    %419 = vector.broadcast %257 : vector<1x32xf32> to vector<16x32xf32>
    %420 = arith.addf %418, %419 : vector<16x32xf32>
    %cst_115 = arith.constant dense<0.000000e+00> : vector<32xf32>
    %421 = vector.multi_reduction <add>, %420, %cst_115 [0] : vector<16x32xf32> to vector<32xf32>
    %422 = vector.shape_cast %421 : vector<32xf32> to vector<1x32xf32>
    %cst_116 = arith.constant 6.250000e-02 : f32
    %423 = vector.broadcast %cst_116 : f32 to vector<1x32xf32>
    %424 = arith.mulf %422, %423 : vector<1x32xf32>
    %425 = arith.mulf %420, %420 : vector<16x32xf32>
    %cst_117 = arith.constant dense<0.000000e+00> : vector<32xf32>
    %426 = vector.multi_reduction <add>, %425, %cst_117 [0] : vector<16x32xf32> to vector<32xf32>
    %427 = vector.shape_cast %426 : vector<32xf32> to vector<1x32xf32>
    %cst_118 = arith.constant 6.250000e-02 : f32
    %428 = vector.broadcast %cst_118 : f32 to vector<1x32xf32>
    %429 = arith.mulf %427, %428 : vector<1x32xf32>
    %430 = arith.mulf %424, %424 : vector<1x32xf32>
    %431 = arith.subf %429, %430 : vector<1x32xf32>
    %cst_119 = arith.constant 0.000000e+00 : f32
    %432 = vector.broadcast %cst_119 : f32 to vector<1x32xf32>
    %433 = arith.maximumf %431, %432 : vector<1x32xf32>
    %434 = vector.broadcast %424 : vector<1x32xf32> to vector<16x32xf32>
    %435 = arith.subf %420, %434 : vector<16x32xf32>
    %cst_120 = arith.constant 9.99999974E-6 : f32
    %436 = vector.broadcast %cst_120 : f32 to vector<1x32xf32>
    %437 = arith.addf %433, %436 : vector<1x32xf32>
    %438 = math.rsqrt %437 : vector<1x32xf32>
    %439 = arith.mulf %438, %258 : vector<1x32xf32>
    %440 = vector.broadcast %439 : vector<1x32xf32> to vector<16x32xf32>
    %441 = arith.mulf %435, %440 : vector<16x32xf32>
    %442 = vector.broadcast %259 : vector<1x32xf32> to vector<16x32xf32>
    %443 = arith.addf %441, %442 : vector<16x32xf32>
    %444 = arith.truncf %443 : vector<16x32xf32> to vector<16x32xbf16>
    %cst_121 = arith.constant dense<0.000000e+00> : vector<16x64xf32>
    %445 = tpu.matmul %444, %250, %cst_121 {dimension_numbers = #tpu.dot_dimension_numbers<[1], [0], [0], [1], [0, 0, 1, 1], [], []>} : vector<16x32xbf16>, vector<32x64xbf16>, vector<16x64xf32> -> vector<16x64xf32>
    %446 = vector.broadcast %256 : vector<1x64xf32> to vector<16x64xf32>
    %447 = arith.addf %445, %446 : vector<16x64xf32>
    %cst_122 = arith.constant 5.000000e-01 : f32
    %448 = vector.broadcast %cst_122 : f32 to vector<16x64xf32>
    %449 = arith.mulf %448, %447 : vector<16x64xf32>
    %cst_123 = arith.constant 4.471500e-02 : f32
    %450 = vector.broadcast %cst_123 : f32 to vector<16x64xf32>
    %451 = arith.mulf %450, %447 : vector<16x64xf32>
    %452 = arith.mulf %451, %447 : vector<16x64xf32>
    %453 = arith.mulf %452, %447 : vector<16x64xf32>
    %454 = arith.addf %447, %453 : vector<16x64xf32>
    %cst_124 = arith.constant 0.797884583 : f32
    %455 = vector.broadcast %cst_124 : f32 to vector<16x64xf32>
    %456 = arith.mulf %455, %454 : vector<16x64xf32>
    %457 = math.tanh %456 : vector<16x64xf32>
    %cst_125 = arith.constant 1.000000e+00 : f32
    %458 = vector.broadcast %cst_125 : f32 to vector<16x64xf32>
    %459 = arith.addf %458, %457 : vector<16x64xf32>
    %460 = arith.mulf %449, %459 : vector<16x64xf32>
    %461 = arith.truncf %460 : vector<16x64xf32> to vector<16x64xbf16>
    %cst_126 = arith.constant dense<0.000000e+00> : vector<16x32xf32>
    %462 = tpu.matmul %461, %252, %cst_126 {dimension_numbers = #tpu.dot_dimension_numbers<[1], [0], [0], [1], [0, 0, 1, 1], [], []>} : vector<16x64xbf16>, vector<64x32xbf16>, vector<16x32xf32> -> vector<16x32xf32>
    %463 = arith.addf %443, %462 : vector<16x32xf32>
    %464 = vector.broadcast %260 : vector<1x32xf32> to vector<16x32xf32>
    %465 = arith.addf %463, %464 : vector<16x32xf32>
    %cst_127 = arith.constant dense<0.000000e+00> : vector<32xf32>
    %466 = vector.multi_reduction <add>, %465, %cst_127 [0] : vector<16x32xf32> to vector<32xf32>
    %467 = vector.shape_cast %466 : vector<32xf32> to vector<1x32xf32>
    %cst_128 = arith.constant 6.250000e-02 : f32
    %468 = vector.broadcast %cst_128 : f32 to vector<1x32xf32>
    %469 = arith.mulf %467, %468 : vector<1x32xf32>
    %470 = arith.mulf %465, %465 : vector<16x32xf32>
    %cst_129 = arith.constant dense<0.000000e+00> : vector<32xf32>
    %471 = vector.multi_reduction <add>, %470, %cst_129 [0] : vector<16x32xf32> to vector<32xf32>
    %472 = vector.shape_cast %471 : vector<32xf32> to vector<1x32xf32>
    %cst_130 = arith.constant 6.250000e-02 : f32
    %473 = vector.broadcast %cst_130 : f32 to vector<1x32xf32>
    %474 = arith.mulf %472, %473 : vector<1x32xf32>
    %475 = arith.mulf %469, %469 : vector<1x32xf32>
    %476 = arith.subf %474, %475 : vector<1x32xf32>
    %cst_131 = arith.constant 0.000000e+00 : f32
    %477 = vector.broadcast %cst_131 : f32 to vector<1x32xf32>
    %478 = arith.maximumf %476, %477 : vector<1x32xf32>
    %479 = vector.broadcast %469 : vector<1x32xf32> to vector<16x32xf32>
    %480 = arith.subf %465, %479 : vector<16x32xf32>
    %cst_132 = arith.constant 9.99999974E-6 : f32
    %481 = vector.broadcast %cst_132 : f32 to vector<1x32xf32>
    %482 = arith.addf %478, %481 : vector<1x32xf32>
    %483 = math.rsqrt %482 : vector<1x32xf32>
    %484 = arith.mulf %483, %261 : vector<1x32xf32>
    %485 = vector.broadcast %484 : vector<1x32xf32> to vector<16x32xf32>
    %486 = arith.mulf %480, %485 : vector<16x32xf32>
    %487 = vector.broadcast %262 : vector<1x32xf32> to vector<16x32xf32>
    %488 = arith.addf %486, %487 : vector<16x32xf32>
    %c0_133 = arith.constant 0 : index
    %c0_134 = arith.constant 0 : index
    %489 = vector.load %arg6[%c0_133, %c0_134] : memref<16x32xf32, #tpu.memory_space<vmem>>, vector<16x32xf32>
    tpu.vector_store %arg6[%c0_133, %c0_134], %488 {strides = array<i32>} : memref<16x32xf32, #tpu.memory_space<vmem>>, vector<16x32xf32>,
    return
  }
}

</mosaic_0001>

<bundles_post_ra>
// kernel: tpu_custom_call.1
= control target key start
LH: loop header
LB: loop body
LE: loop exit
PB: predicated region body
PF: predicated region fallthrough
CT: control target
= control target key end

     0   :  { %11 = vsyncpa [#allocation3], 0  ;;  %s2667_s0 = inlined_call_operand.hbm [shape: f32[16,32], index: 0, kind: input, shape index: {}]   ;;  %s2668_s1 = inlined_call_operand.vmem [shape: bf16[2,32,96], index: 1, kind: input, shape index: {}]   ;;  %s2669_s2 = inlined_call_operand.vmem [shape: bf16[2,32,32], index: 2, kind: input, shape index: {}]   ;;  %s2670_s3 = inlined_call_operand.vmem [shape: bf16[2,32,64], index: 3, kind: input, shape index: {}]   ;;  %s2671_s4 = inlined_call_operand.vmem [shape: bf16[2,64,32], index: 4, kind: input, shape index: {}]   ;;  %s2672_s5 = inlined_call_operand.hbm [shape: f32[2,8,96], index: 5, kind: input, shape index: {}]   ;;  %s2673_s6 = inlined_call_operand.hbm [shape: f32[16,32], index: 6, kind: output, shape index: {}]  }
   0x1   :  { %12 = vsyncpa [#allocation6], 0 }
   0x2   :  { %13 = vsyncpa [#allocation4], 0  ;;  %s18_s23 = sshll.u32 %s2667_s0, 4  ;;  %s2170_s24 = smov [#allocation2]   ;;  %s19_s23 = int_to_ptr.hbm [resolvable:$true] %s18_s23 }
   0x3   :  { %s20_s25 = sshll.u32 %s2170_s24, 4  ;;  %s39_s28 = sshll.u32 %s2672_s5, 4  ;;  %s21_s25 = int_to_ptr.vmem [resolvable:$true] %s20_s25  ;;  %s40_s28 = int_to_ptr.hbm [resolvable:$true] %s39_s28 }
   0x4   :  { %s2171_s29 = smov 128   ;;  %s2172_s30 = smov 8  }
   0x5   :  { %26 = dma.hbm_to_vmem [thread:$0]  %s19_s23, 256, %s21_s25, [#allocation3], %s2171_s29, %s2171_s29, %s2172_s30  }
   0x6   :  { %s2173_s7 = smov [#allocation5]  }
   0x7   :  { %s41_s8 = sshll.u32 %s2173_s7, 4  ;;  %s42_s8 = int_to_ptr.vmem [resolvable:$true] %s41_s8 }
   0x8   :  { %47 = dma.hbm_to_vmem [thread:$0]  %s40_s28, 256, %s42_s8, [#allocation6], %s2171_s29, %s2171_s29, %s2172_s30  }
   0x9   :  { %2164 = dma.done.wait [#allocation3], 256  }
   0xa   :  { %2165 = vsyncadd [#allocation3], 4294967040 }
   0xb   :  { %2166 = dma.done.wait [#allocation6], 256  }
   0xc   :  { %2167 = vsyncadd [#allocation6], 4294967040  ;;  %v1943_v0 = vld [vmem:[%s2668_s1 + $0x8] sm:$0xff]  ;;  %v1942_v1 = vld [vmem:[%s2668_s1] sm:$0xff]  ;;  %vm94_vm0 = vcmask 261120   ;;  %s2174_s11 = smov 104  }
   0xd   :  { %104 = vmatpush.bf16.msra.mxu0 %v1943_v0  ;;  %v2241_v2 = vld [vmem:[#allocation2] sm:$0xff]  ;;  %v2243_v3 = vld [vmem:[#allocation2 + $0x8] sm:$0xff]  ;;  %v2248_v5 = vld [vmem:[#allocation5] sm:$0xff]  ;;  %s2175_s12 = smov 120   ;;  %s2176_s13 = smov 96   ;;  %vm116_vm1 = vcmask 64512  }
   0xe   :  { %v80_v4 = vpack.c.bf16 %v2243_v3, %v2241_v2  ;;  %v81_v6 = vperm.slane %v2248_v5, 0  ;;  %s2177_s14 = smov 80   ;;  %s2178_s15 = smov 72   ;;  %vm166_vm2 = vcmask 1043456  }
   0xf   :  { %s2179_s16 = smov 88   ;;  %s2180_s17 = smov 112  }
  0x10   :  { %s2181_s18 = smov 64   ;;  %s2182_s19 = smov 56  }
  0x11   :  { %105 = vmatpush.bf16.msra.mxu0 %v1942_v1  ;;  %s2183_s20 = smov 40   ;;  %s2184_s21 = smov 48  }
  0x12   :  { %s2185_s22 = smov 24   ;;  %s2186_s23 = smov 16  }
  0x13   :  { %s1788_s25 = sshll.u32 %s2673_s6, 4  ;;  %s1789_s25 = int_to_ptr.hbm [resolvable:$true] %s1788_s25 }
  0x14   :  { %1810 = vmatmul.msk.bf16.vlgmr.msra.gmra.mxu0 %vm94_vm0, %v80_v4 }
  0x91   :  { %v107_v7 = vpop.f32.mrf.mxu0 }
  0x92   :  { %v108_v8 = vadd.f32 %v107_v7, %v81_v6 }
  0x94   :  { %v2251_v9 = vpack.c.bf16 %v108_v8, %v108_v8 }
  0x96   :  { %321 = vrot.lane.b32.xlu2 %v2251_v9, %s2174_s11  ;;  %183 = vrot.lane.b32.xlu1 %v2251_v9, %s2175_s12 }
  0x97   :  { %114 = vrot.lane.b32.xlu0 %v2251_v9, %s2176_s13 }
  0x99   :  { %v109_v10 = vpop.f32.mrf.mxu0 }
  0x9a   :  { %v110_v11 = vadd.f32 %v109_v10, %v81_v6 }
  0x9c   :  { %v2265_v12 = vpack.c.bf16 %v110_v11, %v110_v11 }
  0x9e   :  { %254 = vrot.lane.b32.xlu2 %v2251_v9, %s2177_s14  ;;  %323 = vrot.lane.b32.xlu1 %v2251_v9, %s2178_s15 }
  0x9f   :  { %185 = vrot.lane.b32.xlu0 %v2251_v9, %s2179_s16 }
  0xa6   :  { %476 = vrot.lane.b32.xlu2 %v2265_v12, %s2175_s12  ;;  %252 = vrot.lane.b32.xlu1 %v2251_v9, %s2180_s17 }
  0xa7   :  { %478 = vrot.lane.b32.xlu0 %v2265_v12, %s2179_s16 }
  0xae   :  { %614 = vrot.lane.b32.xlu2 %v2265_v12, %s2174_s11  ;;  %616 = vrot.lane.b32.xlu1 %v2265_v12, %s2178_s15 }
  0xaf   :  { %409 = vrot.lane.b32.xlu0 %v2265_v12, %s2176_s13 }
  0xb6   :  { %545 = vrot.lane.b32.xlu1 %v2265_v12, %s2180_s17 }
  0xb7   :  { %547 = vrot.lane.b32.xlu0 %v2265_v12, %s2177_s14 }
  0xf0   :  { %v322_v13 = vpop.permute.xlu2 %321 }
  0xf8   :  { %v255_v14 = vpop.permute.xlu2 %254 }
  0xf9   :  { %v260_v15 = vsel %vm116_vm1, %v255_v14, 0 }
  0xfa   :  { %269 = vmatpush.bf16.xpose.msrb.mxu0 %v260_v15 }
 0x100   :  { %v477_v32 = vpop.permute.xlu2 %476 }
 0x108   :  { %v184_v16 = vpop.permute.xlu1 %183  ;;  %v615_v34 = vpop.permute.xlu2 %614 }
 0x109   :  { %v115_v17 = vpop.permute.xlu0 %114 }
 0x10a   :  { %v121_v18 = vsel %vm116_vm1, %v115_v17, 0 }
 0x10b   :  { %130 = vmatpush.bf16.xpose.msra.mxu1 %v121_v18 }
 0x110   :  { %v324_v19 = vpop.permute.xlu1 %323 }
 0x111   :  { %v186_v20 = vpop.permute.xlu0 %185  ;;  %v329_v21 = vsel %vm116_vm1, %v324_v19, 0 }
 0x112   :  { %1811 = vmatmul.msk.bf16.vlgmr.msra.gmra.mxu1 %vm116_vm1, %v2251_v9  ;;  %v191_v22 = vsel %vm116_vm1, %v186_v20, 0 }
 0x113   :  { %200 = vmatpush.bf16.xpose.msra.mxu3 %v191_v22 }
 0x118   :  { %v253_v23 = vpop.permute.xlu1 %252 }
 0x119   :  { %v479_v24 = vpop.permute.xlu0 %478  ;;  %1815 = vmatmul.msk.bf16.vlgmr.msrb.gmra.mxu0 %vm116_vm1, %v253_v23 }
 0x11a   :  { %v484_v25 = vsel %vm116_vm1, %v479_v24, 0  ;;  %1813 = vmatmul.msk.bf16.vlgmr.msra.gmra.mxu3 %vm116_vm1, %v184_v16 }
 0x11b   :  { %338 = vmatpush.bf16.xpose.msrb.mxu3 %v329_v21 }
 0x120   :  { %v617_v28 = vpop.permute.xlu1 %616 }
 0x121   :  { %v410_v26 = vpop.permute.xlu0 %409  ;;  %v622_v30 = vsel %vm116_vm1, %v617_v28, 0 }
 0x122   :  { %v415_v27 = vsel %vm116_vm1, %v410_v26, 0 }
 0x123   :  { %493 = vmatpush.bf16.xpose.msra.mxu3 %v484_v25  ;;  %424 = vmatpush.bf16.xpose.msra.mxu0 %v415_v27 }
 0x128   :  { %v546_v33 = vpop.permute.xlu1 %545 }
 0x129   :  { %v548_v29 = vpop.permute.xlu0 %547 }
 0x12a   :  { %v553_v31 = vsel %vm116_vm1, %v548_v29, 0  ;;  %1817 = vmatmul.msk.bf16.vlgmr.msrb.gmra.mxu3 %vm116_vm1, %v322_v13  ;;  %1819 = vmatmul.msk.bf16.vlgmr.msra.gmra.mxu0 %vm116_vm1, %v2265_v12 }
 0x12b   :  { %631 = vmatpush.bf16.xpose.msrb.mxu3 %v622_v30  ;;  %562 = vmatpush.bf16.xpose.msrb.mxu0 %v553_v31 }
 0x13a   :  { %1821 = vmatmul.msk.bf16.vlgmr.msra.gmra.mxu3 %vm116_vm1, %v477_v32  ;;  %1823 = vmatmul.msk.bf16.vlgmr.msrb.gmra.mxu0 %vm116_vm1, %v546_v33 }
 0x14a   :  { %1825 = vmatmul.msk.bf16.vlgmr.msrb.gmra.mxu3 %vm116_vm1, %v615_v34 }
 0x18f   :  { %v132_v35 = vpop.f32.mrf.mxu1 }
 0x190   :  { %v136_v36 = vsel %vm116_vm1, %v132_v35, -inf }
 0x191   :  { %137 = vmax.xlane.f32.xlu2 %v136_v36 }
 0x196   :  { %v271_v37 = vpop.f32.mrf.mxu0 }
 0x197   :  { %v134_v38 = vpop.f32.mrf.mxu1  ;;  %v275_v39 = vsel %vm116_vm1, %v271_v37, -inf }
 0x199   :  { %276 = vmax.xlane.f32.xlu2 %v275_v39 }
 0x19d   :  { %v202_v40 = vpop.f32.mrf.mxu3 }
 0x19e   :  { %v273_v41 = vpop.f32.mrf.mxu0  ;;  %v206_v42 = vsel %vm116_vm1, %v202_v40, -inf }
 0x19f   :  { %207 = vmax.xlane.f32.xlu0 %v206_v42 }
 0x1a5   :  { %v204_v43 = vpop.f32.mrf.mxu3 }
 0x1a7   :  { %v426_v44 = vpop.f32.mrf.mxu0 }
 0x1a8   :  { %v430_v45 = vsel %vm116_vm1, %v426_v44, -inf }
 0x1a9   :  { %431 = vmax.xlane.f32.xlu1 %v430_v45 }
 0x1ad   :  { %v340_v46 = vpop.f32.mrf.mxu3 }
 0x1ae   :  { %v344_v48 = vsel %vm116_vm1, %v340_v46, -inf }
 0x1af   :  { %v428_v47 = vpop.f32.mrf.mxu0 }
 0x1b1   :  { %161 = vrot.lane.b32.xlu2 %v2251_v9, %s2181_s18  ;;  %345 = vmax.xlane.f32.xlu1 %v344_v48 }
 0x1b5   :  { %v342_v49 = vpop.f32.mrf.mxu3 }
 0x1b7   :  { %v2308_v50 = vpop.f32.mrf.mxu0 }
 0x1b8   :  { %v568_v58 = vsel %vm116_vm1, %v2308_v50, -inf }
 0x1bd   :  { %v495_v51 = vpop.f32.mrf.mxu3 }
 0x1be   :  { %v499_v56 = vsel %vm116_vm1, %v495_v51, -inf }
 0x1bf   :  { %v566_v52 = vpop.f32.mrf.mxu0 }
 0x1c5   :  { %v497_v53 = vpop.f32.mrf.mxu3 }
 0x1ca   :  { %231 = vrot.lane.b32.xlu1 %v2251_v9, %s2182_s19 }
 0x1cd   :  { %v633_v54 = vpop.f32.mrf.mxu3 }
 0x1ce   :  { %v637_v57 = vsel %vm116_vm1, %v633_v54, -inf }
 0x1d5   :  { %v635_v55 = vpop.f32.mrf.mxu3 }
 0x1da   :  { %500 = vmax.xlane.f32.xlu2 %v499_v56 }
 0x1e2   :  { %638 = vmax.xlane.f32.xlu2 %v637_v57 }
 0x1f4   :  { %569 = vmax.xlane.f32.xlu1 %v568_v58 }
 0x1fa   :  { %369 = vrot.lane.b32.xlu2 %v2251_v9, %s2183_s20 }
 0x204   :  { %v138_v59 = vpop.xlane.xlu2 %137 }
 0x205   :  { %v139_v60 = vsub.f32 %v132_v35, %v138_v59 }
 0x207   :  { %v140_v61 = vmul.f32 1.442695, %v139_v60 }
 0x209   :  { %2010 = vpow2.f32 %v140_v61 }
 0x20c   :  { %v277_v62 = vpop.xlane.xlu2 %276 }
 0x20d   :  { %v278_v63 = vsub.f32 %v271_v37, %v277_v62  ;;  %300 = vrot.lane.b32.xlu1 %v2251_v9, %s2184_s21 }
 0x20f   :  { %v2320_v0 = vpop.eup %2010  ;;  %v279_v1 = vmul.f32 1.442695, %v278_v63 }
 0x210   :  { %v142_v4 = vsel %vm116_vm1, %v2320_v0, 0.0 }
 0x211   :  { %2012 = vpow2.f32 %v279_v1  ;;  %143 = vadd.xlane.f32.xlu0 %v142_v4 }
 0x212   :  { %v208_v6 = vpop.xlane.xlu0 %207 }
 0x213   :  { %v209_v7 = vsub.f32 %v202_v40, %v208_v6 }
 0x214   :  { %v162_v8 = vpop.permute.xlu2 %161 }
 0x215   :  { %v210_v10 = vmul.f32 1.442695, %v209_v7  ;;  %v168_v11 = vsel %vm166_vm2, %v162_v8, 0 }
 0x216   :  { %177 = vmatpush.bf16.msra.mxu2 %v168_v11 }
 0x217   :  { %v2325_v13 = vpop.eup %2012  ;;  %2014 = vpow2.f32 %v210_v10 }
 0x218   :  { %v281_v9 = vsel %vm116_vm1, %v2325_v13, 0.0 }
 0x219   :  { %282 = vadd.xlane.f32.xlu0 %v281_v9 }
 0x21c   :  { %v432_v14 = vpop.xlane.xlu1 %431 }
 0x21d   :  { %v2329_v15 = vpop.eup %2014  ;;  %v433_v16 = vsub.f32 %v426_v44, %v432_v14 }
 0x21e   :  { %v212_v18 = vsel %vm116_vm1, %v2329_v15, 0.0 }
 0x21f   :  { %v434_v17 = vmul.f32 1.442695, %v433_v16 }
 0x221   :  { %2016 = vpow2.f32 %v434_v17  ;;  %213 = vadd.xlane.f32.xlu0 %v212_v18 }
 0x224   :  { %v346_v19 = vpop.xlane.xlu1 %345 }
 0x225   :  { %v347_v20 = vsub.f32 %v340_v46, %v346_v19 }
 0x227   :  { %v2333_v21 = vpop.eup %2016  ;;  %v348_v22 = vmul.f32 1.442695, %v347_v20 }
 0x228   :  { %v436_v23 = vsel %vm116_vm1, %v2333_v21, 0.0 }
 0x229   :  { %2018 = vpow2.f32 %v348_v22  ;;  %437 = vadd.xlane.f32.xlu0 %v436_v23 }
 0x22f   :  { %v2337_v24 = vpop.eup %2018 }
 0x230   :  { %v350_v25 = vsel %vm116_vm1, %v2337_v24, 0.0 }
 0x231   :  { %351 = vadd.xlane.f32.xlu0 %v350_v25 }
 0x23c   :  { %v232_v26 = vpop.permute.xlu1 %231 }
 0x23d   :  { %v237_v27 = vsel %vm166_vm2, %v232_v26, 0 }
 0x23e   :  { %246 = vmatpush.bf16.msrb.mxu2 %v237_v27 }
 0x24d   :  { %v501_v28 = vpop.xlane.xlu2 %500 }
 0x24e   :  { %v502_v29 = vsub.f32 %v495_v51, %v501_v28 }
 0x250   :  { %v503_v30 = vmul.f32 1.442695, %v502_v29 }
 0x252   :  { %2020 = vpow2.f32 %v503_v30 }
 0x255   :  { %v639_v31 = vpop.xlane.xlu2 %638 }
 0x256   :  { %v640_v32 = vsub.f32 %v633_v54, %v639_v31 }
 0x258   :  { %v2342_v33 = vpop.eup %2020  ;;  %v641_v34 = vmul.f32 1.442695, %v640_v32 }
 0x259   :  { %v505_v35 = vsel %vm116_vm1, %v2342_v33, 0.0 }
 0x25a   :  { %2022 = vpow2.f32 %v641_v34  ;;  %506 = vadd.xlane.f32.xlu0 %v505_v35 }
 0x25d   :  { %v370_v61 = vpop.permute.xlu2 %369 }
 0x25e   :  { %v375_v8 = vsel %vm166_vm2, %v370_v61, 0 }
 0x260   :  { %v2346_v36 = vpop.eup %2022 }
 0x261   :  { %v643_v37 = vsel %vm116_vm1, %v2346_v36, 0.0 }
 0x262   :  { %644 = vadd.xlane.f32.xlu2 %v643_v37 }
 0x267   :  { %v570_v38 = vpop.xlane.xlu1 %569 }
 0x268   :  { %v571_v39 = vsub.f32 %v2308_v50, %v570_v38 }
 0x26a   :  { %v572_v40 = vmul.f32 1.442695, %v571_v39 }
 0x26c   :  { %2024 = vpow2.f32 %v572_v40 }
 0x26e   :  { %524 = vrot.lane.b32.xlu0 %v2265_v12, %s2182_s19 }
 0x272   :  { %v2353_v41 = vpop.eup %2024 }
 0x273   :  { %v574_v42 = vsel %vm116_vm1, %v2353_v41, 0.0 }
 0x274   :  { %575 = vadd.xlane.f32.xlu1 %v574_v42 }
 0x276   :  { %455 = vrot.lane.b32.xlu0 %v2265_v12, %s2181_s18 }
 0x27e   :  { %662 = vrot.lane.b32.xlu0 %v2265_v12, %s2183_s20 }
 0x27f   :  { %v301_v43 = vpop.permute.xlu1 %300 }
 0x280   :  { %v306_v44 = vsel %vm166_vm2, %v301_v43, 0 }
 0x281   :  { %315 = vmatpush.bf16.msrb.mxu1 %v306_v44 }
 0x284   :  { %v144_v45 = vpop.xlane.xlu0 %143 }
 0x285   :  { %2026 = vrcp.f32 %v144_v45  ;;  %v156_v51 = vand.u32 2147483648, %v144_v45  ;;  %v154_v52 = vand.u32 2147483647, %v144_v45  ;;  %vm150_vm4 = vweird.f32 %v144_v45 }
 0x286   :  { %593 = vrot.lane.b32.xlu0 %v2265_v12, %s2184_s21 }
 0x287   :  { %v157_v55 = vor.u32 1.1754944e-38, %v156_v51  ;;  %vm155_vm6 = vcmp.eq.f32.partialorder %v154_v52, 8.507059e+37 }
 0x28b   :  { %v2027_v46 = vpop.eup %2026 }
 0x28c   :  { %v146_v47 = vmul.f32 %v2027_v46, %v144_v45  ;;  %v283_v48 = vpop.xlane.xlu0 %282  ;;  %vm151_vm3 = vweird.f32 %v2027_v46 }
 0x28d   :  { %2028 = vrcp.f32 %v283_v48  ;;  %vm152_vm5 = vmor %vm150_vm4, %vm151_vm3  ;;  %v295_v63 = vand.u32 2147483648, %v283_v48  ;;  %v293_v1 = vand.u32 2147483647, %v283_v48  ;;  %vm289_vm8 = vweird.f32 %v283_v48 }
 0x28e   :  { %v147_v49 = vsub.f32 1.0, %v146_v47 }
 0x28f   :  { %v296_v10 = vor.u32 1.1754944e-38, %v295_v63  ;;  %vm294_vm10 = vcmp.eq.f32.partialorder %v293_v1, 8.507059e+37 }
 0x290   :  { %v148_v50 = vmul.f32 %v2027_v46, %v147_v49 }
 0x292   :  { %v149_v53 = vadd.f32 %v2027_v46, %v148_v50 }
 0x293   :  { %v2029_v54 = vpop.eup %2028 }
 0x294   :  { %v285_v56 = vmul.f32 %v2029_v54, %v283_v48  ;;  %v214_v57 = vpop.xlane.xlu0 %213  ;;  %v153_v58 = vsel %vm152_vm5, %v2027_v46, %v149_v53  ;;  %vm290_vm7 = vweird.f32 %v2029_v54 }
 0x295   :  { %2030 = vrcp.f32 %v214_v57  ;;  %v158_v59 = vsel %vm155_vm6, %v157_v55, %v153_v58  ;;  %vm291_vm9 = vmor %vm289_vm8, %vm290_vm7  ;;  %v226_v19 = vand.u32 2147483648, %v214_v57  ;;  %v224_v20 = vand.u32 2147483647, %v214_v57 }
 0x296   :  { %v286_v12 = vsub.f32 1.0, %v285_v56  ;;  %v159_v60 = vmul.f32 %v2320_v0, %v158_v59  ;;  %vm220_vm12 = vweird.f32 %v214_v57 }
 0x297   :  { %v227_v25 = vor.u32 1.1754944e-38, %v226_v19  ;;  %vm225_vm14 = vcmp.eq.f32.partialorder %v224_v20, 8.507059e+37 }
 0x298   :  { %v287_v62 = vmul.f32 %v2029_v54, %v286_v12  ;;  %v160_v4 = vpack.c.bf16 %v159_v60, %v159_v60 }
 0x29a   :  { %v288_v6 = vadd.f32 %v2029_v54, %v287_v62  ;;  %1812 = vmatmul.msk.bf16.vlgmr.msra.gmra.mxu2 %vm116_vm1, %v160_v4 }
 0x29b   :  { %v2031_v7 = vpop.eup %2030  ;;  %384 = vmatpush.bf16.msra.mxu2 %v375_v8 }
 0x29c   :  { %v216_v11 = vmul.f32 %v2031_v7, %v214_v57  ;;  %v2367_v9 = vpop.xlane.xlu0 %437  ;;  %v292_v0 = vsel %vm291_vm9, %v2029_v54, %v288_v6  ;;  %vm221_vm11 = vweird.f32 %v2031_v7 }
 0x29d   :  { %v297_v16 = vsel %vm294_vm10, %v296_v10, %v292_v0  ;;  %vm222_vm13 = vmor %vm220_vm12, %vm221_vm11  ;;  %v450_v60 = vand.u32 2147483648, %v2367_v9  ;;  %vm444_vm11 = vweird.f32 %v2367_v9  ;;  %v448_v62 = vand.u32 2147483647, %v2367_v9 }
 0x29e   :  { %v217_v14 = vsub.f32 1.0, %v216_v11  ;;  %v298_v17 = vmul.f32 %v2325_v13, %v297_v16 }
 0x29f   :  { %v451_v10 = vor.u32 1.1754944e-38, %v450_v60  ;;  %v1944_v60 = vld [vmem:[%s2669_s2] sm:$0xff] }
 0x2a0   :  { %v218_v18 = vmul.f32 %v2031_v7, %v217_v14  ;;  %v299_v22 = vpack.c.bf16 %v298_v17, %v298_v17 }
 0x2a2   :  { %v219_v23 = vadd.f32 %v2031_v7, %v218_v18  ;;  %1816 = vmatmul.msk.bf16.vlgmr.msrb.gmra.mxu1 %vm116_vm1, %v299_v22 }
 0x2a4   :  { %v352_v26 = vpop.xlane.xlu0 %351  ;;  %v223_v27 = vsel %vm222_vm13, %v2031_v7, %v219_v23  ;;  %vm449_vm13 = vcmp.eq.f32.partialorder %v448_v62, 8.507059e+37 }
 0x2a5   :  { %2032 = vrcp.f32 %v352_v26  ;;  %v228_v28 = vsel %vm225_vm14, %v227_v25, %v223_v27  ;;  %v364_v34 = vand.u32 2147483648, %v352_v26  ;;  %v362_v37 = vand.u32 2147483647, %v352_v26 }
 0x2a6   :  { %v229_v29 = vmul.f32 %v2329_v15, %v228_v28  ;;  %vm358_vm3 = vweird.f32 %v352_v26  ;;  %2034 = vrcp.f32 %v2367_v9 }
 0x2a7   :  { %v365_v39 = vor.u32 1.1754944e-38, %v364_v34  ;;  %vm363_vm5 = vcmp.eq.f32.partialorder %v362_v37, 8.507059e+37 }
 0x2a8   :  { %v230_v30 = vpack.c.bf16 %v229_v29, %v229_v29 }
 0x2aa   :  { %1814 = vmatmul.msk.bf16.vlgmr.msrb.gmra.mxu2 %vm116_vm1, %v230_v30 }
 0x2ab   :  { %v2033_v13 = vpop.eup %2032 }
 0x2ac   :  { %v354_v31 = vmul.f32 %v2033_v13, %v352_v26  ;;  %vm359_vm15 = vweird.f32 %v2033_v13  ;;  %v2035_v45 = vpop.eup %2034 }
 0x2ad   :  { %vm360_vm4 = vmor %vm358_vm3, %vm359_vm15  ;;  %v440_v46 = vmul.f32 %v2035_v45, %v2367_v9  ;;  %vm445_vm8 = vweird.f32 %v2035_v45 }
 0x2ae   :  { %v355_v32 = vsub.f32 1.0, %v354_v31  ;;  %vm446_vm12 = vmor %vm444_vm11, %vm445_vm8 }
 0x2af   :  { %v441_v48 = vsub.f32 1.0, %v440_v46 }
 0x2b0   :  { %v356_v35 = vmul.f32 %v2033_v13, %v355_v32 }
 0x2b1   :  { %v442_v53 = vmul.f32 %v2035_v45, %v441_v48 }
 0x2b2   :  { %v357_v38 = vadd.f32 %v2033_v13, %v356_v35 }
 0x2b3   :  { %v443_v58 = vadd.f32 %v2035_v45, %v442_v53 }
 0x2b4   :  { %v361_v40 = vsel %vm360_vm4, %v2033_v13, %v357_v38 }
 0x2b5   :  { %v366_v42 = vsel %vm363_vm5, %v365_v39, %v361_v40  ;;  %v447_v6 = vsel %vm446_vm12, %v2035_v45, %v443_v58 }
 0x2b6   :  { %v367_v43 = vmul.f32 %v2337_v24, %v366_v42  ;;  %v452_v0 = vsel %vm449_vm13, %v451_v10, %v447_v6 }
 0x2b7   :  { %v453_v9 = vmul.f32 %v2333_v21, %v452_v0 }
 0x2b8   :  { %v368_v15 = vpack.c.bf16 %v367_v43, %v367_v43 }
 0x2b9   :  { %v454_v23 = vpack.c.bf16 %v453_v9, %v453_v9 }
 0x2ba   :  { %1818 = vmatmul.msk.bf16.vlgmr.msra.gmra.mxu2 %vm116_vm1, %v368_v15 }
 0x2cd   :  { %v507_v44 = vpop.xlane.xlu0 %506 }
 0x2ce   :  { %2036 = vrcp.f32 %v507_v44  ;;  %v519_v52 = vand.u32 2147483648, %v507_v44  ;;  %v517_v24 = vand.u32 2147483647, %v507_v44  ;;  %vm513_vm7 = vweird.f32 %v507_v44 }
 0x2d0   :  { %v520_v57 = vor.u32 1.1754944e-38, %v519_v52  ;;  %vm518_vm10 = vcmp.eq.f32.partialorder %v517_v24, 8.507059e+37 }
 0x2d4   :  { %v2037_v47 = vpop.eup %2036 }
 0x2d5   :  { %v509_v49 = vmul.f32 %v2037_v47, %v507_v44  ;;  %v645_v50 = vpop.xlane.xlu2 %644  ;;  %vm514_vm6 = vweird.f32 %v2037_v47 }
 0x2d6   :  { %2038 = vrcp.f32 %v645_v50  ;;  %vm515_vm9 = vmor %vm513_vm7, %vm514_vm6  ;;  %v657_v16 = vand.u32 2147483648, %v645_v50  ;;  %vm651_vm15 = vweird.f32 %v645_v50 }
 0x2d7   :  { %v510_v51 = vsub.f32 1.0, %v509_v49 }
 0x2d8   :  { %v658_v22 = vor.u32 1.1754944e-38, %v657_v16 }
 0x2d9   :  { %v511_v54 = vmul.f32 %v2037_v47, %v510_v51 }
 0x2db   :  { %v512_v55 = vadd.f32 %v2037_v47, %v511_v54 }
 0x2dc   :  { %v2039_v56 = vpop.eup %2038 }
 0x2dd   :  { %v516_v12 = vsel %vm515_vm9, %v2037_v47, %v512_v55  ;;  %v647_v59 = vmul.f32 %v2039_v56, %v645_v50  ;;  %vm652_vm14 = vweird.f32 %v2039_v56  ;;  %vm403_vm9 = vcmask 130048  }
 0x2de   :  { %v521_v61 = vsel %vm518_vm10, %v520_v57, %v516_v12  ;;  %vm653_vm3 = vmor %vm651_vm15, %vm652_vm14  ;;  %vm405_vm10 = vcmask 195584   ;;  %vm852_vm14 = vcmask 523264  }
 0x2df   :  { %v522_v63 = vmul.f32 %v2342_v33, %v521_v61  ;;  %v648_v1 = vsub.f32 1.0, %v647_v59  ;;  %v655_v33 = vand.u32 2147483647, %v645_v50  ;;  %v1945_v59 = vld [vmem:[%s2669_s2 + $0x8] sm:$0xff] }
 0x2e0   :  { %v525_v4 = vpop.permute.xlu0 %524  ;;  %720 = vmatpush.bf16.msra.mxu0 %v1945_v59 }
 0x2e1   :  { %v649_v7 = vmul.f32 %v2039_v56, %v648_v1  ;;  %v530_v8 = vsel %vm166_vm2, %v525_v4, 0  ;;  %v523_v11 = vpack.c.bf16 %v522_v63, %v522_v63  ;;  %vm656_vm4 = vcmp.eq.f32.partialorder %v655_v33, 8.507059e+37 }
 0x2e2   :  { %539 = vmatpush.bf16.msrb.mxu2 %v530_v8 }
 0x2e3   :  { %v650_v14 = vadd.f32 %v2039_v56, %v649_v7 }
 0x2e4   :  { %721 = vmatpush.bf16.msra.mxu0 %v1944_v60  ;;  %v775_v60 = vperm.slane %v2248_v5, 4 }
 0x2e5   :  { %1822 = vmatmul.msk.bf16.vlgmr.msrb.gmra.mxu2 %vm116_vm1, %v523_v11  ;;  %v654_v19 = vsel %vm653_vm3, %v2039_v56, %v650_v14 }
 0x2e6   :  { %v659_v25 = vsel %vm656_vm4, %v658_v22, %v654_v19 }
 0x2e7   :  { %v576_v17 = vpop.xlane.xlu1 %575  ;;  %v660_v27 = vmul.f32 %v2346_v36, %v659_v25 }
 0x2e8   :  { %2040 = vrcp.f32 %v576_v17  ;;  %v456_v18 = vpop.permute.xlu0 %455  ;;  %v588_v13 = vand.u32 2147483648, %v576_v17  ;;  %v586_v32 = vand.u32 2147483647, %v576_v17  ;;  %vm582_vm6 = vweird.f32 %v576_v17 }
 0x2e9   :  { %v461_v20 = vsel %vm166_vm2, %v456_v18, 0  ;;  %v661_v34 = vpack.c.bf16 %v660_v27, %v660_v27 }
 0x2ea   :  { %470 = vmatpush.bf16.msra.mxu1 %v461_v20  ;;  %v589_v37 = vor.u32 1.1754944e-38, %v588_v13  ;;  %vm587_vm8 = vcmp.eq.f32.partialorder %v586_v32, 8.507059e+37  ;;  %v730_v20 = vperm.slane %v2248_v5, 2 }
 0x2ed   :  { %1820 = vmatmul.msk.bf16.vlgmr.msra.gmra.mxu1 %vm116_vm1, %v454_v23 }
 0x2ee   :  { %v2041_v26 = vpop.eup %2040 }
 0x2ef   :  { %v578_v21 = vmul.f32 %v2041_v26, %v576_v17  ;;  %vm583_vm5 = vweird.f32 %v2041_v26 }
 0x2f0   :  { %v663_v28 = vpop.permute.xlu0 %662  ;;  %vm584_vm7 = vmor %vm582_vm6, %vm583_vm5 }
 0x2f1   :  { %v579_v29 = vsub.f32 1.0, %v578_v21  ;;  %v668_v30 = vsel %vm166_vm2, %v663_v28, 0 }
 0x2f2   :  { %677 = vmatpush.bf16.msra.mxu2 %v668_v30 }
 0x2f3   :  { %v580_v31 = vmul.f32 %v2041_v26, %v579_v29 }
 0x2f5   :  { %v581_v35 = vadd.f32 %v2041_v26, %v580_v31  ;;  %1826 = vmatmul.msk.bf16.vlgmr.msra.gmra.mxu2 %vm116_vm1, %v661_v34 }
 0x2f7   :  { %v585_v38 = vsel %vm584_vm7, %v2041_v26, %v581_v35 }
 0x2f8   :  { %v590_v36 = vsel %vm587_vm8, %v589_v37, %v585_v38  ;;  %v594_v39 = vpop.permute.xlu0 %593 }
 0x2f9   :  { %v591_v40 = vmul.f32 %v2353_v41, %v590_v36  ;;  %v599_v42 = vsel %vm166_vm2, %v594_v39, 0 }
 0x2fa   :  { %608 = vmatpush.bf16.msrb.mxu1 %v599_v42 }
 0x2fb   :  { %v592_v43 = vpack.c.bf16 %v591_v40, %v591_v40 }
 0x2fd   :  { %1824 = vmatmul.msk.bf16.vlgmr.msrb.gmra.mxu1 %vm116_vm1, %v592_v43 }
 0x31d   :  { %v179_v15 = vpop.f32.mrf.mxu2 }
 0x31f   :  { %v317_v44 = vpop.f32.mrf.mxu1 }
 0x325   :  { %v181_v45 = vpop.f32.mrf.mxu2 }
 0x327   :  { %v319_v46 = vpop.f32.mrf.mxu1 }
 0x32d   :  { %v248_v47 = vpop.f32.mrf.mxu2 }
 0x335   :  { %v250_v48 = vpop.f32.mrf.mxu2 }
 0x336   :  { %v1946_v48 = vld [vmem:[%s2670_s3] sm:$0xff] }
 0x33d   :  { %v386_v49 = vpop.f32.mrf.mxu2 }
 0x345   :  { %v388_v50 = vpop.f32.mrf.mxu2 }
 0x368   :  { %v541_v51 = vpop.f32.mrf.mxu2 }
 0x369   :  { %v1980_v52 = vpack.i.bf16 %v541_v51, %v248_v47 }
 0x36a   :  { %v472_v53 = vpop.f32.mrf.mxu1 }
 0x36b   :  { %1981 = vrot.lane.b32.xlu2 %v1980_v52, %s2172_s30 }
 0x370   :  { %v543_v41 = vpop.f32.mrf.mxu2 }
 0x372   :  { %v474_v54 = vpop.f32.mrf.mxu1 }
 0x378   :  { %v679_v24 = vpop.f32.mrf.mxu2 }
 0x379   :  { %v1990_v55 = vpack.i.bf16 %v679_v24, %v386_v49 }
 0x37a   :  { %v610_v56 = vpop.f32.mrf.mxu1 }
 0x37b   :  { %v1985_v57 = vpack.i.bf16 %v610_v56, %v317_v44  ;;  %1991 = vrot.lane.b32.xlu0 %v1990_v55, %s2185_s22 }
 0x37d   :  { %1986 = vrot.lane.b32.xlu1 %v1985_v57, %s2186_s23 }
 0x380   :  { %v681_v58 = vpop.f32.mrf.mxu2 }
 0x382   :  { %v612_v12 = vpop.f32.mrf.mxu1 }
 0x3c5   :  { %v1982_v61 = vpop.permute.xlu2 %1981 }
 0x3c6   :  { %v1984_v62 = vunpack.i.h.bf16 %v1982_v61  ;;  %v1983_v63 = vunpack.i.l.bf16 %v1982_v61 }
 0x3c8   :  { %v402_v8 = vsel %vm116_vm1, %v179_v15, %v1983_v63  ;;  %v695_v10 = vsel %vm116_vm1, %v472_v53, %v1984_v62  ;;  %v1947_v15 = vld [vmem:[%s2670_s3 + $0x8] sm:$0xff] }
 0x3c9   :  { %801 = vmatpush.bf16.msra.mxu1 %v1947_v15 }
 0x3cd   :  { %802 = vmatpush.bf16.msra.mxu1 %v1946_v48 }
 0x3ed   :  { %v1992_v1 = vpop.permute.xlu0 %1991 }
 0x3ee   :  { %v1994_v11 = vunpack.i.h.bf16 %v1992_v1  ;;  %v1993_v0 = vunpack.i.l.bf16 %v1992_v1 }
 0x3ef   :  { %v1987_v4 = vpop.permute.xlu1 %1986 }
 0x3f0   :  { %v1989_v6 = vunpack.i.h.bf16 %v1987_v4  ;;  %v1988_v7 = vunpack.i.l.bf16 %v1987_v4 }
 0x3f2   :  { %v696_v14 = vsel %vm403_vm9, %v695_v10, %v1989_v6  ;;  %v404_v16 = vsel %vm403_vm9, %v402_v8, %v1988_v7  ;;  %v1951_v6 = vld [vmem:[%s2671_s4 + $0x18] sm:$0xff]  ;;  %v1950_v7 = vld [vmem:[%s2671_s4 + $0x10] sm:$0xff]  ;;  %v1949_v8 = vld [vmem:[%s2671_s4 + $0x8] sm:$0xff]  ;;  %v779_v10 = vperm.slane %v2248_v5, 1 }
 0x3f3   :  { %v406_v9 = vsel %vm405_vm10, %v404_v16, %v1993_v0  ;;  %v697_v33 = vsel %vm405_vm10, %v696_v14, %v1994_v11  ;;  %860 = vmatpush.bf16.msra.mxu3 %v1951_v6  ;;  %v1948_v11 = vld [vmem:[%s2671_s4] sm:$0xff] }
 0x3f4   :  { %v698_v17 = vpack.c.bf16 %v697_v33, %v406_v9 }
 0x3f6   :  { %1835 = vmatmul.msk.bf16.vlgmr.msra.gmra.mxu0 %vm94_vm0, %v698_v17 }
 0x3f7   :  { %861 = vmatpush.bf16.msra.mxu3 %v1950_v7 }
 0x3fb   :  { %862 = vmatpush.bf16.msra.mxu3 %v1949_v8 }
 0x3ff   :  { %863 = vmatpush.bf16.msra.mxu3 %v1948_v11 }
 0x473   :  { %v723_v18 = vpop.f32.mrf.mxu0 }
 0x474   :  { %v728_v19 = vadd.f32 %v723_v18, %v2241_v2 }
 0x476   :  { %v731_v22 = vadd.f32 %v730_v20, %v728_v19 }
 0x478   :  { %v743_v26 = vmul.f32 %v731_v22, %v731_v22  ;;  %v733_v21 = vsel %vm94_vm0, %v731_v22, 0.0 }
 0x47a   :  { %v745_v13 = vsel %vm94_vm0, %v743_v26, 0.0 }
 0x47b   :  { %v725_v23 = vpop.f32.mrf.mxu0 }
 0x47c   :  { %v729_v25 = vadd.f32 %v725_v23, %v2243_v3 }
 0x47e   :  { %v732_v27 = vadd.f32 %v730_v20, %v729_v25 }
 0x480   :  { %v734_v28 = vsel %vm94_vm0, %v732_v27, 0.0  ;;  %v744_v29 = vmul.f32 %v732_v27, %v732_v27 }
 0x481   :  { %v735_v30 = vadd.f32 %v734_v28, %v733_v21 }
 0x482   :  { %v746_v31 = vsel %vm94_vm0, %v744_v29, 0.0 }
 0x483   :  { %v736_v32 = vrot.slane %v735_v30, 4  ;;  %v747_v2 = vadd.f32 %v746_v31, %v745_v13 }
 0x485   :  { %v737_v34 = vadd.f32 %v736_v32, %v735_v30  ;;  %v748_v35 = vrot.slane %v747_v2, 4 }
 0x487   :  { %v738_v37 = vrot.slane %v737_v34, 2  ;;  %v749_v38 = vadd.f32 %v748_v35, %v747_v2 }
 0x489   :  { %v739_v36 = vadd.f32 %v738_v37, %v737_v34  ;;  %v750_v3 = vrot.slane %v749_v38, 2 }
 0x48b   :  { %v740_v39 = vrot.slane %v739_v36, 1  ;;  %v751_v40 = vadd.f32 %v750_v3, %v749_v38  ;;  %v872_v38 = vperm.slane %v2248_v5, 5 }
 0x48d   :  { %v741_v42 = vadd.f32 %v740_v39, %v739_v36  ;;  %v752_v43 = vrot.slane %v751_v40, 1 }
 0x48f   :  { %v742_v44 = vmul.f32 0.0625, %v741_v42  ;;  %v753_v45 = vadd.f32 %v752_v43, %v751_v40 }
 0x491   :  { %v754_v46 = vmul.f32 0.0625, %v753_v45  ;;  %v755_v47 = vmul.f32 %v742_v44, %v742_v44  ;;  %v758_v58 = vsub.f32 %v731_v22, %v742_v44  ;;  %v759_v12 = vsub.f32 %v732_v27, %v742_v44 }
 0x493   :  { %v756_v49 = vsub.f32 %v754_v46, %v755_v47 }
 0x495   :  { %v757_v50 = vmax.f32 %v756_v49, 0.0 }
 0x497   :  { %v760_v51 = vadd.f32 1e-05, %v757_v50 }
 0x499   :  { %2042 = vrsqrt.f32 %v760_v51  ;;  %vm767_vm12 = vweird.f32 %v760_v51 }
 0x49f   :  { %v2043_v52 = vpop.eup %2042 }
 0x4a0   :  { %v762_v53 = vmul.f32 %v2043_v52, %v760_v51  ;;  %vm768_vm11 = vweird.f32 %v2043_v52 }
 0x4a1   :  { %vm769_vm13 = vmor %vm767_vm12, %vm768_vm11 }
 0x4a2   :  { %v763_v41 = vmul.f32 %v2043_v52, %v762_v53 }
 0x4a4   :  { %v764_v54 = vmul.f32 0.5, %v763_v41 }
 0x4a6   :  { %v765_v24 = vsub.f32 1.5, %v764_v54 }
 0x4a8   :  { %v766_v55 = vmul.f32 %v2043_v52, %v765_v24 }
 0x4aa   :  { %v770_v56 = vsel %vm769_vm13, %v2043_v52, %v766_v55 }
 0x4ab   :  { %v771_v57 = vmul.f32 %v770_v56, %v2248_v5 }
 0x4ad   :  { %v772_v59 = vperm.slane %v771_v57, 3  ;;  %v1953_v57 = vld [vmem:[%s2668_s1 + $0x18] sm:$0xff] }
 0x4ae   :  { %969 = vmatpush.bf16.msrb.mxu2 %v1953_v57 }
 0x4af   :  { %v773_v61 = vmul.f32 %v772_v59, %v758_v58  ;;  %v774_v62 = vmul.f32 %v772_v59, %v759_v12 }
 0x4b1   :  { %v777_v63 = vadd.f32 %v775_v60, %v774_v62  ;;  %v776_v1 = vadd.f32 %v775_v60, %v773_v61  ;;  %v1952_v61 = vld [vmem:[%s2668_s1 + $0x10] sm:$0xff] }
 0x4b2   :  { %970 = vmatpush.bf16.msrb.mxu2 %v1952_v61 }
 0x4b3   :  { %v778_v4 = vpack.c.bf16 %v777_v63, %v776_v1 }
 0x4b5   :  { %1844 = vmatmul.msk.bf16.vlgmr.msra.gmra.mxu1 %vm94_vm0, %v778_v4 }
 0x532   :  { %v804_v0 = vpop.f32.mrf.mxu1 }
 0x533   :  { %v805_v14 = vadd.f32 %v804_v0, %v779_v10 }
 0x535   :  { %v811_v16 = vmul.f32 0.044715, %v805_v14  ;;  %v809_v30 = vmul.f32 0.5, %v805_v14 }
 0x537   :  { %v813_v9 = vmul.f32 %v811_v16, %v805_v14 }
 0x539   :  { %v815_v33 = vmul.f32 %v813_v9, %v805_v14 }
 0x53a   :  { %v806_v17 = vpop.f32.mrf.mxu1 }
 0x53b   :  { %v817_v18 = vadd.f32 %v815_v33, %v805_v14  ;;  %v807_v19 = vadd.f32 %v806_v17, %v779_v10  ;;  %v2090_v14 = vld [vmem:[#allocation5] sm:$0xff] }
 0x53d   :  { %v812_v20 = vmul.f32 0.044715, %v807_v19  ;;  %v819_v22 = vmul.f32 0.7978846, %v817_v18  ;;  %v810_v13 = vmul.f32 0.5, %v807_v19  ;;  %v917_v18 = vperm.slane %v2090_v14, 7 }
 0x53f   :  { %v814_v23 = vmul.f32 %v812_v20, %v807_v19  ;;  %2044 = vtanh.f32 %v819_v22 }
 0x541   :  { %v816_v25 = vmul.f32 %v814_v23, %v807_v19 }
 0x543   :  { %v818_v26 = vadd.f32 %v816_v25, %v807_v19 }
 0x545   :  { %v820_v27 = vmul.f32 0.7978846, %v818_v26  ;;  %v2045_v21 = vpop.eup %2044  ;;  %v2456_v26 = vld [vmem:[#allocation5 + $0x8] sm:$0xff] }
 0x546   :  { %v823_v28 = vadd.f32 1.0, %v2045_v21 }
 0x547   :  { %2046 = vtanh.f32 %v820_v27  ;;  %v947_v27 = vperm.slane %v2456_v26, 0 }
 0x548   :  { %v825_v32 = vmul.f32 %v823_v28, %v809_v30 }
 0x54d   :  { %v2047_v29 = vpop.eup %2046 }
 0x54e   :  { %v824_v31 = vadd.f32 1.0, %v2047_v29 }
 0x550   :  { %v826_v2 = vmul.f32 %v824_v31, %v810_v13 }
 0x552   :  { %v827_v34 = vpack.c.bf16 %v826_v2, %v825_v32 }
 0x554   :  { %1861 = vmatmul.msk.bf16.vlgmr.msra.gmra.mxu3 %vm852_vm14, %v827_v34 }
 0x5d7   :  { %v865_v35 = vpop.f32.mrf.mxu3 }
 0x5d8   :  { %v870_v37 = vadd.f32 %v865_v35, %v776_v1 }
 0x5da   :  { %v873_v36 = vadd.f32 %v872_v38, %v870_v37 }
 0x5dc   :  { %v885_v40 = vmul.f32 %v873_v36, %v873_v36  ;;  %v875_v43 = vsel %vm94_vm0, %v873_v36, 0.0 }
 0x5de   :  { %v887_v46 = vsel %vm94_vm0, %v885_v40, 0.0 }
 0x5df   :  { %v867_v3 = vpop.f32.mrf.mxu3 }
 0x5e0   :  { %v871_v39 = vadd.f32 %v867_v3, %v777_v63 }
 0x5e2   :  { %v874_v42 = vadd.f32 %v872_v38, %v871_v39 }
 0x5e4   :  { %v876_v15 = vsel %vm94_vm0, %v874_v42, 0.0  ;;  %v886_v44 = vmul.f32 %v874_v42, %v874_v42 }
 0x5e5   :  { %v877_v45 = vadd.f32 %v876_v15, %v875_v43 }
 0x5e6   :  { %v888_v47 = vsel %vm94_vm0, %v886_v44, 0.0 }
 0x5e7   :  { %v878_v48 = vrot.slane %v877_v45, 4  ;;  %v889_v49 = vadd.f32 %v888_v47, %v887_v46 }
 0x5e9   :  { %v879_v50 = vadd.f32 %v878_v48, %v877_v45  ;;  %v890_v51 = vrot.slane %v889_v49, 4 }
 0x5eb   :  { %v880_v5 = vrot.slane %v879_v50, 2  ;;  %v891_v52 = vadd.f32 %v890_v51, %v889_v49 }
 0x5ed   :  { %v881_v53 = vadd.f32 %v880_v5, %v879_v50  ;;  %v892_v41 = vrot.slane %v891_v52, 2 }
 0x5ef   :  { %v882_v54 = vrot.slane %v881_v53, 1  ;;  %v893_v24 = vadd.f32 %v892_v41, %v891_v52 }
 0x5f1   :  { %v883_v55 = vadd.f32 %v882_v54, %v881_v53  ;;  %v894_v56 = vrot.slane %v893_v24, 1 }
 0x5f3   :  { %v884_v58 = vmul.f32 0.0625, %v883_v55  ;;  %v895_v12 = vadd.f32 %v894_v56, %v893_v24 }
 0x5f5   :  { %v896_v59 = vmul.f32 0.0625, %v895_v12  ;;  %v897_v60 = vmul.f32 %v884_v58, %v884_v58  ;;  %v900_v9 = vsub.f32 %v873_v36, %v884_v58  ;;  %v901_v33 = vsub.f32 %v874_v42, %v884_v58 }
 0x5f7   :  { %v898_v62 = vsub.f32 %v896_v59, %v897_v60 }
 0x5f9   :  { %v899_v63 = vmax.f32 %v898_v62, 0.0 }
 0x5fb   :  { %v902_v1 = vadd.f32 1e-05, %v899_v63 }
 0x5fd   :  { %2048 = vrsqrt.f32 %v902_v1  ;;  %vm909_vm3 = vweird.f32 %v902_v1 }
 0x603   :  { %v2049_v4 = vpop.eup %2048 }
 0x604   :  { %v904_v6 = vmul.f32 %v2049_v4, %v902_v1  ;;  %vm910_vm15 = vweird.f32 %v2049_v4 }
 0x605   :  { %vm911_vm4 = vmor %vm909_vm3, %vm910_vm15 }
 0x606   :  { %v905_v7 = vmul.f32 %v2049_v4, %v904_v6 }
 0x608   :  { %v906_v8 = vmul.f32 0.5, %v905_v7 }
 0x60a   :  { %v907_v10 = vsub.f32 1.5, %v906_v8 }
 0x60c   :  { %v908_v11 = vmul.f32 %v2049_v4, %v907_v10 }
 0x60e   :  { %v912_v0 = vsel %vm911_vm4, %v2049_v4, %v908_v11 }
 0x60f   :  { %v913_v16 = vmul.f32 %v2090_v14, %v912_v0 }
 0x611   :  { %v914_v17 = vperm.slane %v913_v16, 6 }
 0x613   :  { %v915_v19 = vmul.f32 %v914_v17, %v900_v9  ;;  %v916_v20 = vmul.f32 %v914_v17, %v901_v33 }
 0x615   :  { %v2449_v22 = vadd.f32 %v917_v18, %v916_v20  ;;  %v2451_v23 = vadd.f32 %v917_v18, %v915_v19 }
 0x617   :  { %v946_v25 = vpack.c.bf16 %v2449_v22, %v2451_v23 }
 0x619   :  { %1890 = vmatmul.msk.bf16.vlgmr.msrb.gmra.mxu2 %vm94_vm0, %v946_v25 }
 0x69c   :  { %v972_v21 = vpop.f32.mrf.mxu2 }
 0x69d   :  { %v973_v28 = vadd.f32 %v972_v21, %v947_v27 }
 0x69f   :  { %v2459_v29 = vpack.c.bf16 %v973_v28, %v973_v28 }
 0x6a1   :  { %1184 = vrot.lane.b32.xlu1 %v2459_v29, %s2174_s11  ;;  %979 = vrot.lane.b32.xlu2 %v2459_v29, %s2176_s13 }
 0x6a2   :  { %1048 = vrot.lane.b32.xlu0 %v2459_v29, %s2179_s16 }
 0x6a4   :  { %v974_v30 = vpop.f32.mrf.mxu2 }
 0x6a5   :  { %v975_v13 = vadd.f32 %v974_v30, %v947_v27 }
 0x6a7   :  { %v2473_v31 = vpack.c.bf16 %v975_v13, %v975_v13 }
 0x6a9   :  { %1115 = vrot.lane.b32.xlu1 %v2459_v29, %s2180_s17  ;;  %1117 = vrot.lane.b32.xlu2 %v2459_v29, %s2177_s14 }
 0x6aa   :  { %1046 = vrot.lane.b32.xlu0 %v2459_v29, %s2175_s12 }
 0x6b1   :  { %1477 = vrot.lane.b32.xlu1 %v2473_v31, %s2178_s15  ;;  %1337 = vrot.lane.b32.xlu2 %v2473_v31, %s2175_s12 }
 0x6b2   :  { %1186 = vrot.lane.b32.xlu0 %v2459_v29, %s2178_s15 }
 0x6b9   :  { %1406 = vrot.lane.b32.xlu1 %v2473_v31, %s2180_s17  ;;  %1475 = vrot.lane.b32.xlu2 %v2473_v31, %s2174_s11 }
 0x6ba   :  { %1339 = vrot.lane.b32.xlu0 %v2473_v31, %s2179_s16 }
 0x6c2   :  { %1270 = vrot.lane.b32.xlu0 %v2473_v31, %s2176_s13 }
 0x6ca   :  { %1408 = vrot.lane.b32.xlu0 %v2473_v31, %s2177_s14 }
 0x6fb   :  { %v980_v32 = vpop.permute.xlu2 %979 }
 0x6fc   :  { %v985_v2 = vsel %vm116_vm1, %v980_v32, 0 }
 0x6fd   :  { %994 = vmatpush.bf16.xpose.msrb.mxu0 %v985_v2 }
 0x703   :  { %v1118_v34 = vpop.permute.xlu2 %1117 }
 0x704   :  { %v1123_v35 = vsel %vm116_vm1, %v1118_v34, 0  ;;  %1891 = vmatmul.msk.bf16.vlgmr.msrb.gmra.mxu0 %vm116_vm1, %v2459_v29 }
 0x705   :  { %1132 = vmatpush.bf16.xpose.msra.mxu0 %v1123_v35 }
 0x70b   :  { %v1338_v48 = vpop.permute.xlu2 %1337 }
 0x713   :  { %v1185_v37 = vpop.permute.xlu1 %1184  ;;  %v1476_v51 = vpop.permute.xlu2 %1475 }
 0x714   :  { %v1049_v38 = vpop.permute.xlu0 %1048 }
 0x715   :  { %v1054_v36 = vsel %vm116_vm1, %v1049_v38, 0 }
 0x716   :  { %1063 = vmatpush.bf16.xpose.msrb.mxu3 %v1054_v36 }
 0x71b   :  { %v1116_v3 = vpop.permute.xlu1 %1115 }
 0x71c   :  { %v1047_v39 = vpop.permute.xlu0 %1046  ;;  %1895 = vmatmul.msk.bf16.vlgmr.msra.gmra.mxu0 %vm116_vm1, %v1116_v3 }
 0x71d   :  { %1893 = vmatmul.msk.bf16.vlgmr.msrb.gmra.mxu3 %vm116_vm1, %v1047_v39 }
 0x723   :  { %v1478_v43 = vpop.permute.xlu1 %1477 }
 0x724   :  { %v1187_v40 = vpop.permute.xlu0 %1186  ;;  %v1483_v45 = vsel %vm116_vm1, %v1478_v43, 0 }
 0x725   :  { %v1192_v42 = vsel %vm116_vm1, %v1187_v40, 0 }
 0x726   :  { %1201 = vmatpush.bf16.xpose.msra.mxu3 %v1192_v42 }
 0x72b   :  { %v1407_v5 = vpop.permute.xlu1 %1406 }
 0x72c   :  { %v1340_v15 = vpop.permute.xlu0 %1339 }
 0x72d   :  { %v1345_v44 = vsel %vm116_vm1, %v1340_v15, 0  ;;  %1897 = vmatmul.msk.bf16.vlgmr.msra.gmra.mxu3 %vm116_vm1, %v1185_v37 }
 0x72e   :  { %1354 = vmatpush.bf16.xpose.msrb.mxu3 %v1345_v44 }
 0x734   :  { %v1271_v46 = vpop.permute.xlu0 %1270 }
 0x735   :  { %v1276_v47 = vsel %vm116_vm1, %v1271_v46, 0 }
 0x736   :  { %1492 = vmatpush.bf16.xpose.msra.mxu3 %v1483_v45  ;;  %1285 = vmatpush.bf16.xpose.msrb.mxu0 %v1276_v47 }
 0x73c   :  { %v1409_v49 = vpop.permute.xlu0 %1408 }
 0x73d   :  { %v1414_v50 = vsel %vm116_vm1, %v1409_v49, 0  ;;  %1899 = vmatmul.msk.bf16.vlgmr.msrb.gmra.mxu0 %vm116_vm1, %v2473_v31  ;;  %1901 = vmatmul.msk.bf16.vlgmr.msrb.gmra.mxu3 %vm116_vm1, %v1338_v48 }
 0x73e   :  { %1423 = vmatpush.bf16.xpose.msra.mxu0 %v1414_v50 }
 0x74d   :  { %1903 = vmatmul.msk.bf16.vlgmr.msra.gmra.mxu0 %vm116_vm1, %v1407_v5  ;;  %1905 = vmatmul.msk.bf16.vlgmr.msra.gmra.mxu3 %vm116_vm1, %v1476_v51 }
 0x781   :  { %v996_v52 = vpop.f32.mrf.mxu0 }
 0x782   :  { %v1000_v53 = vsel %vm116_vm1, %v996_v52, -inf }
 0x783   :  { %1001 = vmax.xlane.f32.xlu0 %v1000_v53 }
 0x789   :  { %v998_v41 = vpop.f32.mrf.mxu0 }
 0x799   :  { %v1134_v54 = vpop.f32.mrf.mxu0 }
 0x79a   :  { %v1138_v58 = vsel %vm116_vm1, %v1134_v54, -inf }
 0x7a0   :  { %v1065_v24 = vpop.f32.mrf.mxu3 }
 0x7a1   :  { %v1136_v55 = vpop.f32.mrf.mxu0  ;;  %v1069_v56 = vsel %vm116_vm1, %v1065_v24, -inf }
 0x7a2   :  { %1070 = vmax.xlane.f32.xlu2 %v1069_v56 }
 0x7a8   :  { %v1067_v57 = vpop.f32.mrf.mxu3 }
 0x7aa   :  { %1139 = vmax.xlane.f32.xlu2 %v1138_v58 }
 0x7b0   :  { %v2512_v12 = vpop.f32.mrf.mxu3 }
 0x7b1   :  { %v1207_v59 = vsel %vm116_vm1, %v2512_v12, -inf }
 0x7b2   :  { %1208 = vmax.xlane.f32.xlu1 %v1207_v59 }
 0x7b8   :  { %v1205_v60 = vpop.f32.mrf.mxu3 }
 0x7ba   :  { %v1287_v61 = vpop.f32.mrf.mxu0 }
 0x7bb   :  { %v1291_v62 = vsel %vm116_vm1, %v1287_v61, -inf }
 0x7bc   :  { %1292 = vmax.xlane.f32.xlu1 %v1291_v62 }
 0x7c0   :  { %v1356_v63 = vpop.f32.mrf.mxu3 }
 0x7c1   :  { %v1360_v1 = vsel %vm116_vm1, %v1356_v63, -inf }
 0x7c2   :  { %1232 = vrot.lane.b32.xlu2 %v2459_v29, %s2183_s20  ;;  %1361 = vmax.xlane.f32.xlu0 %v1360_v1  ;;  %v1289_v4 = vpop.f32.mrf.mxu0 }
 0x7c8   :  { %v1358_v6 = vpop.f32.mrf.mxu3 }
 0x7ca   :  { %v2520_v7 = vpop.f32.mrf.mxu0 }
 0x7cb   :  { %v1429_v8 = vsel %vm116_vm1, %v2520_v7, -inf }
 0x7cc   :  { %1430 = vmax.xlane.f32.xlu1 %v1429_v8 }
 0x7d0   :  { %v2524_v10 = vpop.f32.mrf.mxu3 }
 0x7d1   :  { %v1498_v14 = vsel %vm116_vm1, %v2524_v10, -inf }
 0x7d2   :  { %v1427_v11 = vpop.f32.mrf.mxu0 }
 0x7d6   :  { %1025 = vrot.lane.b32.xlu0 %v2459_v29, %s2181_s18 }
 0x7d8   :  { %v1496_v0 = vpop.f32.mrf.mxu3 }
 0x7e5   :  { %1094 = vrot.lane.b32.xlu1 %v2459_v29, %s2182_s19 }
 0x7eb   :  { %1499 = vmax.xlane.f32.xlu2 %v1498_v14 }
 0x7f6   :  { %v1002_v16 = vpop.xlane.xlu0 %1001 }
 0x7f7   :  { %v1003_v9 = vsub.f32 %v996_v52, %v1002_v16 }
 0x7f9   :  { %v1004_v33 = vmul.f32 1.442695, %v1003_v9 }
 0x7fb   :  { %2050 = vpow2.f32 %v1004_v33 }
 0x801   :  { %v2532_v17 = vpop.eup %2050 }
 0x802   :  { %v1006_v18 = vsel %vm116_vm1, %v2532_v17, 0.0 }
 0x803   :  { %1007 = vadd.xlane.f32.xlu2 %v1006_v18 }
 0x815   :  { %v1071_v19 = vpop.xlane.xlu2 %1070 }
 0x816   :  { %v1072_v20 = vsub.f32 %v1065_v24, %v1071_v19 }
 0x818   :  { %v1073_v25 = vmul.f32 1.442695, %v1072_v20 }
 0x81a   :  { %2052 = vpow2.f32 %v1073_v25 }
 0x81d   :  { %v1140_v27 = vpop.xlane.xlu2 %1139 }
 0x81e   :  { %v1141_v21 = vsub.f32 %v1134_v54, %v1140_v27 }
 0x820   :  { %v2536_v28 = vpop.eup %2052  ;;  %v1142_v30 = vmul.f32 1.442695, %v1141_v21 }
 0x821   :  { %v1075_v13 = vsel %vm116_vm1, %v2536_v28, 0.0 }
 0x822   :  { %2054 = vpow2.f32 %v1142_v30  ;;  %1076 = vadd.xlane.f32.xlu0 %v1075_v13 }
 0x825   :  { %v1209_v32 = vpop.xlane.xlu1 %1208  ;;  %v1233_v48 = vpop.permute.xlu2 %1232 }
 0x826   :  { %v1238_v51 = vsel %vm166_vm2, %v1233_v48, 0 }
 0x828   :  { %v2540_v2 = vpop.eup %2054 }
 0x829   :  { %v1144_v34 = vsel %vm116_vm1, %v2540_v2, 0.0 }
 0x82a   :  { %1145 = vadd.xlane.f32.xlu2 %v1144_v34 }
 0x82f   :  { %v1293_v35 = vpop.xlane.xlu1 %1292 }
 0x830   :  { %v1294_v37 = vsub.f32 %v1287_v61, %v1293_v35 }
 0x832   :  { %v1295_v38 = vmul.f32 1.442695, %v1294_v37 }
 0x834   :  { %2056 = vpow2.f32 %v1295_v38 }
 0x835   :  { %v1362_v36 = vpop.xlane.xlu0 %1361 }
 0x836   :  { %v1363_v3 = vsub.f32 %v1356_v63, %v1362_v36  ;;  %1163 = vrot.lane.b32.xlu0 %v2459_v29, %s2184_s21  ;;  %v1210_v29 = vsub.f32 %v2512_v12, %v1209_v32 }
 0x838   :  { %v1364_v39 = vmul.f32 1.442695, %v1363_v3  ;;  %v1211_v47 = vmul.f32 1.442695, %v1210_v29 }
 0x83a   :  { %v2546_v40 = vpop.eup %2056  ;;  %2058 = vpow2.f32 %v1364_v39 }
 0x83b   :  { %v1297_v42 = vsel %vm116_vm1, %v2546_v40, 0.0  ;;  %2060 = vpow2.f32 %v1211_v47 }
 0x83c   :  { %1298 = vadd.xlane.f32.xlu1 %v1297_v42 }
 0x83f   :  { %v1431_v46 = vpop.xlane.xlu1 %1430 }
 0x840   :  { %v2550_v43 = vpop.eup %2058  ;;  %v1432_v56 = vsub.f32 %v2520_v7, %v1431_v46 }
 0x841   :  { %v1366_v15 = vsel %vm116_vm1, %v2550_v43, 0.0  ;;  %v2562_v5 = vpop.eup %2060 }
 0x842   :  { %1367 = vadd.xlane.f32.xlu2 %v1366_v15  ;;  %v1213_v41 = vsel %vm116_vm1, %v2562_v5, 0.0  ;;  %v1433_v57 = vmul.f32 1.442695, %v1432_v56 }
 0x848   :  { %v1026_v44 = vpop.permute.xlu0 %1025 }
 0x849   :  { %v1031_v45 = vsel %vm166_vm2, %v1026_v44, 0 }
 0x84a   :  { %1040 = vmatpush.bf16.msrb.mxu1 %v1031_v45 }
 0x855   :  { %1316 = vrot.lane.b32.xlu1 %v2473_v31, %s2181_s18 }
 0x857   :  { %v1095_v49 = vpop.permute.xlu1 %1094 }
 0x858   :  { %v1100_v50 = vsel %vm166_vm2, %v1095_v49, 0 }
 0x859   :  { %1109 = vmatpush.bf16.msra.mxu2 %v1100_v50 }
 0x85a   :  { %1385 = vrot.lane.b32.xlu2 %v2473_v31, %s2182_s19 }
 0x85d   :  { %1247 = vmatpush.bf16.msrb.mxu2 %v1238_v51  ;;  %1454 = vrot.lane.b32.xlu1 %v2473_v31, %s2184_s21 }
 0x85e   :  { %v1500_v52 = vpop.xlane.xlu2 %1499 }
 0x85f   :  { %v1501_v53 = vsub.f32 %v2524_v10, %v1500_v52 }
 0x860   :  { %1214 = vadd.xlane.f32.xlu0 %v1213_v41 }
 0x861   :  { %v1502_v54 = vmul.f32 1.442695, %v1501_v53 }
 0x863   :  { %2062 = vpow2.f32 %v1502_v54 }
 0x869   :  { %v2569_v24 = vpop.eup %2062 }
 0x86a   :  { %v1504_v55 = vsel %vm116_vm1, %v2569_v24, 0.0 }
 0x86b   :  { %1505 = vadd.xlane.f32.xlu0 %v1504_v55 }
 0x876   :  { %v1008_v58 = vpop.xlane.xlu2 %1007 }
 0x877   :  { %2064 = vrcp.f32 %v1008_v58  ;;  %v1020_v62 = vand.u32 2147483648, %v1008_v58  ;;  %v1018_v1 = vand.u32 2147483647, %v1008_v58  ;;  %vm1014_vm6 = vweird.f32 %v1008_v58 }
 0x878   :  { %2066 = vpow2.f32 %v1433_v57 }
 0x879   :  { %v1021_v7 = vor.u32 1.1754944e-38, %v1020_v62  ;;  %vm1019_vm8 = vcmp.eq.f32.partialorder %v1018_v1, 8.507059e+37 }
 0x87d   :  { %v2065_v12 = vpop.eup %2064 }
 0x87e   :  { %v1010_v59 = vmul.f32 %v2065_v12, %v1008_v58  ;;  %v2574_v60 = vpop.eup %2066  ;;  %vm1015_vm5 = vweird.f32 %v2065_v12 }
 0x87f   :  { %1523 = vrot.lane.b32.xlu0 %v2473_v31, %s2183_s20  ;;  %v1435_v4 = vsel %vm116_vm1, %v2574_v60, 0.0  ;;  %vm1016_vm7 = vmor %vm1014_vm6, %vm1015_vm5 }
 0x880   :  { %v1011_v61 = vsub.f32 1.0, %v1010_v59 }
 0x882   :  { %v1012_v63 = vmul.f32 %v2065_v12, %v1011_v61 }
 0x883   :  { %1436 = vadd.xlane.f32.xlu2 %v1435_v4 }
 0x884   :  { %v1013_v6 = vadd.f32 %v2065_v12, %v1012_v63 }
 0x886   :  { %v1017_v8 = vsel %vm1016_vm7, %v2065_v12, %v1013_v6 }
 0x887   :  { %v1022_v10 = vsel %vm1019_vm8, %v1021_v7, %v1017_v8 }
 0x888   :  { %v1023_v11 = vmul.f32 %v2532_v17, %v1022_v10 }
 0x88a   :  { %v1024_v0 = vpack.c.bf16 %v1023_v11, %v1023_v11 }
 0x88c   :  { %1892 = vmatmul.msk.bf16.vlgmr.msrb.gmra.mxu1 %vm116_vm1, %v1024_v0 }
 0x895   :  { %v1077_v31 = vpop.xlane.xlu0 %1076 }
 0x896   :  { %2068 = vrcp.f32 %v1077_v31  ;;  %v1089_v18 = vand.u32 2147483648, %v1077_v31  ;;  %v1087_v20 = vand.u32 2147483647, %v1077_v31  ;;  %vm1083_vm12 = vweird.f32 %v1077_v31 }
 0x898   :  { %v1090_v21 = vor.u32 1.1754944e-38, %v1089_v18  ;;  %vm1088_vm15 = vcmp.eq.f32.partialorder %v1087_v20, 8.507059e+37 }
 0x89c   :  { %v2069_v14 = vpop.eup %2068 }
 0x89d   :  { %v1079_v16 = vmul.f32 %v2069_v14, %v1077_v31  ;;  %v1146_v9 = vpop.xlane.xlu2 %1145  ;;  %vm1084_vm11 = vweird.f32 %v2069_v14 }
 0x89e   :  { %2070 = vrcp.f32 %v1146_v9  ;;  %vm1085_vm13 = vmor %vm1083_vm12, %vm1084_vm11  ;;  %v1156_v35 = vand.u32 2147483647, %v1146_v9  ;;  %v1158_v37 = vand.u32 2147483648, %v1146_v9  ;;  %vm1152_vm4 = vweird.f32 %v1146_v9 }
 0x89f   :  { %v1080_v33 = vsub.f32 1.0, %v1079_v16 }
 0x8a0   :  { %v1159_v15 = vor.u32 1.1754944e-38, %v1158_v37  ;;  %vm1157_vm6 = vcmp.eq.f32.partialorder %v1156_v35, 8.507059e+37 }
 0x8a1   :  { %v1081_v19 = vmul.f32 %v2069_v14, %v1080_v33 }
 0x8a3   :  { %v1082_v25 = vadd.f32 %v2069_v14, %v1081_v19 }
 0x8a4   :  { %v2071_v27 = vpop.eup %2070 }
 0x8a5   :  { %v1086_v17 = vsel %vm1085_vm13, %v2069_v14, %v1082_v25  ;;  %v1148_v30 = vmul.f32 %v2071_v27, %v1146_v9  ;;  %vm1153_vm3 = vweird.f32 %v2071_v27 }
 0x8a6   :  { %v1091_v13 = vsel %vm1088_vm15, %v1090_v21, %v1086_v17  ;;  %vm1154_vm5 = vmor %vm1152_vm4, %vm1153_vm3 }
 0x8a7   :  { %v1092_v32 = vmul.f32 %v2536_v28, %v1091_v13  ;;  %v1149_v34 = vsub.f32 1.0, %v1148_v30 }
 0x8a8   :  { %v1164_v38 = vpop.permute.xlu0 %1163 }
 0x8a9   :  { %v1150_v36 = vmul.f32 %v2071_v27, %v1149_v34  ;;  %v1169_v3 = vsel %vm166_vm2, %v1164_v38, 0  ;;  %v1093_v39 = vpack.c.bf16 %v1092_v32, %v1092_v32 }
 0x8aa   :  { %1178 = vmatpush.bf16.msra.mxu1 %v1169_v3 }
 0x8ab   :  { %v1151_v42 = vadd.f32 %v2071_v27, %v1150_v36  ;;  %1894 = vmatmul.msk.bf16.vlgmr.msra.gmra.mxu2 %vm116_vm1, %v1093_v39 }
 0x8ad   :  { %v1155_v44 = vsel %vm1154_vm5, %v2071_v27, %v1151_v42 }
 0x8ae   :  { %v1160_v45 = vsel %vm1157_vm6, %v1159_v15, %v1155_v44 }
 0x8af   :  { %v1161_v28 = vmul.f32 %v2540_v2, %v1160_v45  ;;  %v1299_v29 = vpop.xlane.xlu1 %1298 }
 0x8b0   :  { %2072 = vrcp.f32 %v1299_v29  ;;  %v1311_v53 = vand.u32 2147483648, %v1299_v29  ;;  %vm1305_vm8 = vweird.f32 %v1299_v29  ;;  %v1309_v54 = vand.u32 2147483647, %v1299_v29 }
 0x8b1   :  { %v1162_v46 = vpack.c.bf16 %v1161_v28, %v1161_v28 }
 0x8b2   :  { %v1312_v56 = vor.u32 1.1754944e-38, %v1311_v53  ;;  %vm1310_vm12 = vcmp.eq.f32.partialorder %v1309_v54, 8.507059e+37 }
 0x8b3   :  { %1896 = vmatmul.msk.bf16.vlgmr.msra.gmra.mxu1 %vm116_vm1, %v1162_v46 }
 0x8b5   :  { %v2587_v47 = vpop.xlane.xlu2 %1367 }
 0x8b6   :  { %v2073_v48 = vpop.eup %2072  ;;  %2074 = vrcp.f32 %v2587_v47  ;;  %v1380_v17 = vand.u32 2147483648, %v2587_v47  ;;  %vm1374_vm6 = vweird.f32 %v2587_v47  ;;  %v1378_v30 = vand.u32 2147483647, %v2587_v47 }
 0x8b7   :  { %v1301_v49 = vmul.f32 %v2073_v48, %v1299_v29  ;;  %vm1306_vm7 = vweird.f32 %v2073_v48 }
 0x8b8   :  { %vm1307_vm11 = vmor %vm1305_vm8, %vm1306_vm7  ;;  %v1381_v34 = vor.u32 1.1754944e-38, %v1380_v17  ;;  %vm1379_vm8 = vcmp.eq.f32.partialorder %v1378_v30, 8.507059e+37 }
 0x8b9   :  { %v1302_v50 = vsub.f32 1.0, %v1301_v49 }
 0x8bb   :  { %v1303_v51 = vmul.f32 %v2073_v48, %v1302_v50 }
 0x8bc   :  { %v2075_v4 = vpop.eup %2074 }
 0x8bd   :  { %v1304_v52 = vadd.f32 %v2073_v48, %v1303_v51  ;;  %v1386_v41 = vpop.permute.xlu2 %1385  ;;  %vm1375_vm5 = vweird.f32 %v2075_v4 }
 0x8be   :  { %v1391_v55 = vsel %vm166_vm2, %v1386_v41, 0  ;;  %vm1376_vm7 = vmor %vm1374_vm6, %vm1375_vm5 }
 0x8bf   :  { %1400 = vmatpush.bf16.msra.mxu2 %v1391_v55  ;;  %v1308_v2 = vsel %vm1307_vm11, %v2073_v48, %v1304_v52 }
 0x8c0   :  { %v1313_v57 = vsel %vm1310_vm12, %v1312_v56, %v1308_v2 }
 0x8c1   :  { %v1314_v58 = vmul.f32 %v2546_v40, %v1313_v57  ;;  %v1370_v40 = vmul.f32 %v2075_v4, %v2587_v47 }
 0x8c3   :  { %v1315_v61 = vpack.c.bf16 %v1314_v58, %v1314_v58  ;;  %v1371_v31 = vsub.f32 1.0, %v1370_v40 }
 0x8c5   :  { %v1372_v19 = vmul.f32 %v2075_v4, %v1371_v31 }
 0x8c7   :  { %v1317_v12 = vpop.permute.xlu1 %1316  ;;  %v1373_v27 = vadd.f32 %v2075_v4, %v1372_v19 }
 0x8c8   :  { %v1322_v59 = vsel %vm166_vm2, %v1317_v12, 0 }
 0x8c9   :  { %1331 = vmatpush.bf16.msrb.mxu1 %v1322_v59  ;;  %v1377_v13 = vsel %vm1376_vm7, %v2075_v4, %v1373_v27 }
 0x8ca   :  { %v1382_v35 = vsel %vm1379_vm8, %v1381_v34, %v1377_v13 }
 0x8cb   :  { %v1383_v36 = vmul.f32 %v2550_v43, %v1382_v35 }
 0x8cc   :  { %1900 = vmatmul.msk.bf16.vlgmr.msrb.gmra.mxu1 %vm116_vm1, %v1315_v61 }
 0x8cd   :  { %v1384_v42 = vpack.c.bf16 %v1383_v36, %v1383_v36 }
 0x8cf   :  { %v1455_v62 = vpop.permute.xlu1 %1454 }
 0x8d0   :  { %v1460_v63 = vsel %vm166_vm2, %v1455_v62, 0 }
 0x8d1   :  { %1469 = vmatpush.bf16.msra.mxu1 %v1460_v63 }
 0x8d3   :  { %v1215_v1 = vpop.xlane.xlu0 %1214 }
 0x8d4   :  { %2076 = vrcp.f32 %v1215_v1  ;;  %v1227_v10 = vand.u32 2147483648, %v1215_v1  ;;  %v1225_v0 = vand.u32 2147483647, %v1215_v1  ;;  %vm1221_vm15 = vweird.f32 %v1215_v1 }
 0x8d6   :  { %v1228_v9 = vor.u32 1.1754944e-38, %v1227_v10  ;;  %vm1226_vm4 = vcmp.eq.f32.partialorder %v1225_v0, 8.507059e+37 }
 0x8da   :  { %v2077_v6 = vpop.eup %2076 }
 0x8db   :  { %v1217_v7 = vmul.f32 %v2077_v6, %v1215_v1  ;;  %vm1222_vm13 = vweird.f32 %v2077_v6 }
 0x8dc   :  { %vm1223_vm3 = vmor %vm1221_vm15, %vm1222_vm13 }
 0x8dd   :  { %v1218_v8 = vsub.f32 1.0, %v1217_v7 }
 0x8de   :  { %v1506_v16 = vpop.xlane.xlu0 %1505 }
 0x8df   :  { %v1219_v11 = vmul.f32 %v2077_v6, %v1218_v8  ;;  %2078 = vrcp.f32 %v1506_v16  ;;  %v1518_v44 = vand.u32 2147483648, %v1506_v16  ;;  %vm1512_vm12 = vweird.f32 %v1506_v16 }
 0x8e0   :  { %v1516_v45 = vand.u32 2147483647, %v1506_v16 }
 0x8e1   :  { %v1220_v14 = vadd.f32 %v2077_v6, %v1219_v11  ;;  %v1519_v46 = vor.u32 1.1754944e-38, %v1518_v44 }
 0x8e3   :  { %v1224_v33 = vsel %vm1223_vm3, %v2077_v6, %v1220_v14 }
 0x8e4   :  { %v1229_v18 = vsel %vm1226_vm4, %v1228_v9, %v1224_v33  ;;  %v1954_v9 = vld [vmem:[%s2669_s2 + $0x10] sm:$0xff] }
 0x8e5   :  { %v1230_v20 = vmul.f32 %v2562_v5, %v1229_v18  ;;  %v2079_v21 = vpop.eup %2078 }
 0x8e6   :  { %v1508_v32 = vmul.f32 %v2079_v21, %v1506_v16  ;;  %vm1513_vm11 = vweird.f32 %v2079_v21  ;;  %v1955_v16 = vld [vmem:[%s2669_s2 + $0x18] sm:$0xff] }
 0x8e7   :  { %v1231_v25 = vpack.c.bf16 %v1230_v20, %v1230_v20  ;;  %vm1514_vm13 = vmor %vm1512_vm12, %vm1513_vm11  ;;  %1581 = vmatpush.bf16.msrb.mxu0 %v1955_v16 }
 0x8e8   :  { %v1509_v37 = vsub.f32 1.0, %v1508_v32 }
 0x8e9   :  { %1898 = vmatmul.msk.bf16.vlgmr.msrb.gmra.mxu2 %vm116_vm1, %v1231_v25 }
 0x8ea   :  { %v1510_v3 = vmul.f32 %v2079_v21, %v1509_v37 }
 0x8eb   :  { %1582 = vmatpush.bf16.msrb.mxu0 %v1954_v9  ;;  %v1636_v9 = vperm.slane %v2456_v26, 4 }
 0x8ec   :  { %v1511_v15 = vadd.f32 %v2079_v21, %v1510_v3 }
 0x8ee   :  { %v1515_v29 = vsel %vm1514_vm13, %v2079_v21, %v1511_v15 }
 0x8f1   :  { %v1524_v5 = vpop.permute.xlu0 %1523 }
 0x8f2   :  { %v1529_v38 = vsel %vm166_vm2, %v1524_v5, 0  ;;  %vm1517_vm2 = vcmp.eq.f32.partialorder %v1516_v45, 8.507059e+37 }
 0x8f3   :  { %1538 = vmatpush.bf16.msrb.mxu2 %v1529_v38  ;;  %v1520_v48 = vsel %vm1517_vm2, %v1519_v46, %v1515_v29 }
 0x8f4   :  { %v1521_v52 = vmul.f32 %v2569_v24, %v1520_v48 }
 0x8f6   :  { %v1437_v39 = vpop.xlane.xlu2 %1436  ;;  %v1522_v2 = vpack.c.bf16 %v1521_v52, %v1521_v52 }
 0x8f7   :  { %2080 = vrcp.f32 %v1437_v39  ;;  %v1449_v49 = vand.u32 2147483648, %v1437_v39  ;;  %v1447_v51 = vand.u32 2147483647, %v1437_v39  ;;  %vm1443_vm3 = vweird.f32 %v1437_v39 }
 0x8f9   :  { %1902 = vmatmul.msk.bf16.vlgmr.msra.gmra.mxu2 %vm116_vm1, %v1384_v42  ;;  %v1450_v41 = vor.u32 1.1754944e-38, %v1449_v49  ;;  %vm1448_vm5 = vcmp.eq.f32.partialorder %v1447_v51, 8.507059e+37 }
 0x8fd   :  { %v2081_v28 = vpop.eup %2080 }
 0x8fe   :  { %v1439_v47 = vmul.f32 %v2081_v28, %v1437_v39  ;;  %vm1444_vm15 = vweird.f32 %v2081_v28  ;;  %v1591_v39 = vperm.slane %v2456_v26, 2 }
 0x8ff   :  { %vm1445_vm4 = vmor %vm1443_vm3, %vm1444_vm15 }
 0x900   :  { %v1440_v43 = vsub.f32 1.0, %v1439_v47 }
 0x902   :  { %v1441_v50 = vmul.f32 %v2081_v28, %v1440_v43 }
 0x904   :  { %v1442_v53 = vadd.f32 %v2081_v28, %v1441_v50 }
 0x906   :  { %v1446_v54 = vsel %vm1445_vm4, %v2081_v28, %v1442_v53 }
 0x907   :  { %v1451_v55 = vsel %vm1448_vm5, %v1450_v41, %v1446_v54 }
 0x908   :  { %v1452_v56 = vmul.f32 %v2574_v60, %v1451_v55 }
 0x909   :  { %1906 = vmatmul.msk.bf16.vlgmr.msrb.gmra.mxu2 %vm116_vm1, %v1522_v2  ;;  %v1042_v57 = vpop.f32.mrf.mxu1 }
 0x90a   :  { %v1453_v58 = vpack.c.bf16 %v1452_v56, %v1452_v56 }
 0x90c   :  { %1904 = vmatmul.msk.bf16.vlgmr.msra.gmra.mxu1 %vm116_vm1, %v1453_v58  ;;  %v1957_v58 = vld [vmem:[%s2670_s3 + $0x18] sm:$0xff] }
 0x90d   :  { %1662 = vmatpush.bf16.msrb.mxu1 %v1957_v58 }
 0x911   :  { %v1044_v12 = vpop.f32.mrf.mxu1 }
 0x92e   :  { %v1111_v59 = vpop.f32.mrf.mxu2 }
 0x930   :  { %v1180_v61 = vpop.f32.mrf.mxu1 }
 0x936   :  { %v1113_v24 = vpop.f32.mrf.mxu2 }
 0x938   :  { %v1182_v62 = vpop.f32.mrf.mxu1 }
 0x939   :  { %v1956_v62 = vld [vmem:[%s2670_s3 + $0x10] sm:$0xff] }
 0x93a   :  { %1663 = vmatpush.bf16.msrb.mxu1 %v1956_v62 }
 0x949   :  { %v1333_v63 = vpop.f32.mrf.mxu1 }
 0x951   :  { %v1335_v1 = vpop.f32.mrf.mxu1 }
 0x96c   :  { %v1249_v4 = vpop.f32.mrf.mxu2 }
 0x974   :  { %v1251_v6 = vpop.f32.mrf.mxu2 }
 0x97c   :  { %v1402_v7 = vpop.f32.mrf.mxu2 }
 0x97d   :  { %v1995_v40 = vpack.i.bf16 %v1402_v7, %v1111_v59 }
 0x97f   :  { %1996 = vrot.lane.b32.xlu2 %v1995_v40, %s2172_s30 }
 0x984   :  { %v1404_v60 = vpop.f32.mrf.mxu2 }
 0x989   :  { %v1471_v8 = vpop.f32.mrf.mxu1 }
 0x98a   :  { %v2000_v10 = vpack.i.bf16 %v1471_v8, %v1180_v61 }
 0x98c   :  { %2001 = vrot.lane.b32.xlu0 %v2000_v10, %s2186_s23  ;;  %v1540_v11 = vpop.f32.mrf.mxu2 }
 0x98d   :  { %v2005_v0 = vpack.i.bf16 %v1540_v11, %v1249_v4 }
 0x98f   :  { %2006 = vrot.lane.b32.xlu1 %v2005_v0, %s2185_s22 }
 0x991   :  { %v1473_v31 = vpop.f32.mrf.mxu1 }
 0x994   :  { %v1542_v14 = vpop.f32.mrf.mxu2 }
 0x9d9   :  { %v1997_v33 = vpop.permute.xlu2 %1996 }
 0x9da   :  { %v1999_v18 = vunpack.i.h.bf16 %v1997_v33  ;;  %v1998_v19 = vunpack.i.l.bf16 %v1997_v33 }
 0x9dc   :  { %v1556_v17 = vsel %vm116_vm1, %v1333_v63, %v1999_v18  ;;  %v1265_v30 = vsel %vm116_vm1, %v1042_v57, %v1998_v19 }
 0x9fe   :  { %v2002_v20 = vpop.permute.xlu0 %2001 }
 0x9ff   :  { %v2004_v25 = vunpack.i.h.bf16 %v2002_v20  ;;  %v2003_v27 = vunpack.i.l.bf16 %v2002_v20 }
 0xa01   :  { %v2007_v21 = vpop.permute.xlu1 %2006  ;;  %v1557_v34 = vsel %vm403_vm9, %v1556_v17, %v2004_v25  ;;  %v1266_v35 = vsel %vm403_vm9, %v1265_v30, %v2003_v27  ;;  %v1961_v27 = vld [vmem:[%s2671_s4 + $0x38] sm:$0xff]  ;;  %v1959_v17 = vld [vmem:[%s2671_s4 + $0x28] sm:$0xff]  ;;  %v1958_v30 = vld [vmem:[%s2671_s4 + $0x20] sm:$0xff] }
 0xa02   :  { %v2009_v13 = vunpack.i.h.bf16 %v2007_v21  ;;  %v2008_v32 = vunpack.i.l.bf16 %v2007_v21  ;;  %1720 = vmatpush.bf16.msrb.mxu3 %v1961_v27  ;;  %v1960_v21 = vld [vmem:[%s2671_s4 + $0x30] sm:$0xff]  ;;  %s2187_s4 = smov [#allocation7]  }
 0xa03   :  { %s1786_s9 = sshll.u32 %s2187_s4, 4  ;;  %s1787_s9 = int_to_ptr.vmem [resolvable:$true] %s1786_s9 }
 0xa04   :  { %v1267_v37 = vsel %vm405_vm10, %v1266_v35, %v2008_v32  ;;  %v1558_v5 = vsel %vm405_vm10, %v1557_v34, %v2009_v13  ;;  %v1640_v13 = vperm.slane %v2456_v26, 1 }
 0xa05   :  { %v1559_v38 = vpack.c.bf16 %v1558_v5, %v1267_v37 }
 0xa06   :  { %1721 = vmatpush.bf16.msrb.mxu3 %v1960_v21 }
 0xa07   :  { %1915 = vmatmul.msk.bf16.vlgmr.msrb.gmra.mxu0 %vm94_vm0, %v1559_v38 }
 0xa0a   :  { %1722 = vmatpush.bf16.msrb.mxu3 %v1959_v17 }
 0xa0e   :  { %1723 = vmatpush.bf16.msrb.mxu3 %v1958_v30 }
 0xa84   :  { %v1584_v36 = vpop.f32.mrf.mxu0 }
 0xa85   :  { %v1589_v3 = vadd.f32 %v1584_v36, %v2451_v23 }
 0xa87   :  { %v1592_v42 = vadd.f32 %v1591_v39, %v1589_v3 }
 0xa89   :  { %v1604_v45 = vmul.f32 %v1592_v42, %v1592_v42  ;;  %v1594_v29 = vsel %vm94_vm0, %v1592_v42, 0.0 }
 0xa8b   :  { %v1606_v43 = vsel %vm94_vm0, %v1604_v45, 0.0 }
 0xa8c   :  { %v1586_v15 = vpop.f32.mrf.mxu0 }
 0xa8d   :  { %v1590_v44 = vadd.f32 %v1586_v15, %v2449_v22 }
 0xa8f   :  { %v1593_v28 = vadd.f32 %v1591_v39, %v1590_v44 }
 0xa91   :  { %v1595_v46 = vsel %vm94_vm0, %v1593_v28, 0.0  ;;  %v1605_v47 = vmul.f32 %v1593_v28, %v1593_v28 }
 0xa92   :  { %v1596_v48 = vadd.f32 %v1595_v46, %v1594_v29 }
 0xa93   :  { %v1607_v49 = vsel %vm94_vm0, %v1605_v47, 0.0 }
 0xa94   :  { %v1597_v50 = vrot.slane %v1596_v48, 4  ;;  %v1608_v23 = vadd.f32 %v1607_v49, %v1606_v43 }
 0xa96   :  { %v1598_v51 = vadd.f32 %v1597_v50, %v1596_v48  ;;  %v1609_v52 = vrot.slane %v1608_v23, 4 }
 0xa98   :  { %v1599_v53 = vrot.slane %v1598_v51, 2  ;;  %v1610_v41 = vadd.f32 %v1609_v52, %v1608_v23 }
 0xa9a   :  { %v1600_v54 = vadd.f32 %v1599_v53, %v1598_v51  ;;  %v1611_v22 = vrot.slane %v1610_v41, 2 }
 0xa9c   :  { %v1601_v55 = vrot.slane %v1600_v54, 1  ;;  %v1612_v2 = vadd.f32 %v1611_v22, %v1610_v41  ;;  %v1732_v41 = vperm.slane %v2456_v26, 5 }
 0xa9e   :  { %v1602_v56 = vadd.f32 %v1601_v55, %v1600_v54  ;;  %v1613_v57 = vrot.slane %v1612_v2, 1 }
 0xaa0   :  { %v1603_v12 = vmul.f32 0.0625, %v1602_v56  ;;  %v1614_v59 = vadd.f32 %v1613_v57, %v1612_v2 }
 0xaa2   :  { %v1615_v61 = vmul.f32 0.0625, %v1614_v59  ;;  %v1616_v24 = vmul.f32 %v1603_v12, %v1603_v12  ;;  %v1619_v31 = vsub.f32 %v1592_v42, %v1603_v12  ;;  %v1620_v14 = vsub.f32 %v1593_v28, %v1603_v12 }
 0xaa4   :  { %v1617_v63 = vsub.f32 %v1615_v61, %v1616_v24 }
 0xaa6   :  { %v1618_v1 = vmax.f32 %v1617_v63, 0.0 }
 0xaa8   :  { %v1621_v4 = vadd.f32 1e-05, %v1618_v1 }
 0xaaa   :  { %2082 = vrsqrt.f32 %v1621_v4  ;;  %vm1628_vm9 = vweird.f32 %v1621_v4 }
 0xab0   :  { %v2083_v6 = vpop.eup %2082 }
 0xab1   :  { %v1623_v7 = vmul.f32 %v2083_v6, %v1621_v4  ;;  %vm1629_vm1 = vweird.f32 %v2083_v6 }
 0xab2   :  { %vm1630_vm10 = vmor %vm1628_vm9, %vm1629_vm1 }
 0xab3   :  { %v1624_v40 = vmul.f32 %v2083_v6, %v1623_v7 }
 0xab5   :  { %v1625_v60 = vmul.f32 0.5, %v1624_v40 }
 0xab7   :  { %v1626_v8 = vsub.f32 1.5, %v1625_v60 }
 0xab9   :  { %v1627_v10 = vmul.f32 %v2083_v6, %v1626_v8 }
 0xabb   :  { %v1631_v11 = vsel %vm1630_vm10, %v2083_v6, %v1627_v10 }
 0xabc   :  { %v1632_v0 = vmul.f32 %v1631_v11, %v2456_v26 }
 0xabe   :  { %v1633_v16 = vperm.slane %v1632_v0, 3 }
 0xac0   :  { %v1634_v33 = vmul.f32 %v1633_v16, %v1619_v31  ;;  %v1635_v18 = vmul.f32 %v1633_v16, %v1620_v14 }
 0xac2   :  { %v1638_v19 = vadd.f32 %v1636_v9, %v1635_v18  ;;  %v1637_v20 = vadd.f32 %v1636_v9, %v1634_v33 }
 0xac4   :  { %v1639_v25 = vpack.c.bf16 %v1638_v19, %v1637_v20 }
 0xac6   :  { %1924 = vmatmul.msk.bf16.vlgmr.msrb.gmra.mxu1 %vm94_vm0, %v1639_v25 }
 0xb43   :  { %v1665_v32 = vpop.f32.mrf.mxu1 }
 0xb44   :  { %v1666_v34 = vadd.f32 %v1665_v32, %v1640_v13 }
 0xb46   :  { %v1672_v35 = vmul.f32 0.044715, %v1666_v34  ;;  %v1670_v48 = vmul.f32 0.5, %v1666_v34 }
 0xb48   :  { %v1674_v37 = vmul.f32 %v1672_v35, %v1666_v34 }
 0xb4a   :  { %v1676_v5 = vmul.f32 %v1674_v37, %v1666_v34 }
 0xb4b   :  { %v1667_v38 = vpop.f32.mrf.mxu1 }
 0xb4c   :  { %v1678_v36 = vadd.f32 %v1676_v5, %v1666_v34  ;;  %v1668_v3 = vadd.f32 %v1667_v38, %v1640_v13  ;;  %v2091_v13 = vld [vmem:[#allocation5 + $0x8] sm:$0xff] }
 0xb4d   :  { %v1777_v5 = vperm.slane %v2091_v13, 7 }
 0xb4e   :  { %v1673_v39 = vmul.f32 0.044715, %v1668_v3  ;;  %v1680_v42 = vmul.f32 0.7978846, %v1678_v36  ;;  %v1671_v43 = vmul.f32 0.5, %v1668_v3 }
 0xb50   :  { %v1675_v15 = vmul.f32 %v1673_v39, %v1668_v3  ;;  %2084 = vtanh.f32 %v1680_v42 }
 0xb52   :  { %v1677_v44 = vmul.f32 %v1675_v15, %v1668_v3 }
 0xb54   :  { %v1679_v45 = vadd.f32 %v1677_v44, %v1668_v3 }
 0xb56   :  { %v1681_v28 = vmul.f32 0.7978846, %v1679_v45  ;;  %v2085_v29 = vpop.eup %2084 }
 0xb57   :  { %v1684_v46 = vadd.f32 1.0, %v2085_v29 }
 0xb58   :  { %2086 = vtanh.f32 %v1681_v28 }
 0xb59   :  { %v1686_v50 = vmul.f32 %v1684_v46, %v1670_v48 }
 0xb5e   :  { %v2087_v47 = vpop.eup %2086 }
 0xb5f   :  { %v1685_v49 = vadd.f32 1.0, %v2087_v47 }
 0xb61   :  { %v1687_v23 = vmul.f32 %v1685_v49, %v1671_v43 }
 0xb63   :  { %v1688_v51 = vpack.c.bf16 %v1687_v23, %v1686_v50 }
 0xb65   :  { %1941 = vmatmul.msk.bf16.vlgmr.msrb.gmra.mxu3 %vm852_vm14, %v1688_v51 }
 0xbe8   :  { %v1725_v52 = vpop.f32.mrf.mxu3 }
 0xbe9   :  { %v1730_v53 = vadd.f32 %v1725_v52, %v1637_v20 }
 0xbeb   :  { %v1733_v54 = vadd.f32 %v1732_v41, %v1730_v53 }
 0xbed   :  { %v1745_v2 = vmul.f32 %v1733_v54, %v1733_v54  ;;  %v1735_v57 = vsel %vm94_vm0, %v1733_v54, 0.0 }
 0xbef   :  { %v1747_v61 = vsel %vm94_vm0, %v1745_v2, 0.0 }
 0xbf0   :  { %v1727_v22 = vpop.f32.mrf.mxu3 }
 0xbf1   :  { %v1731_v55 = vadd.f32 %v1727_v22, %v1638_v19 }
 0xbf3   :  { %v1734_v56 = vadd.f32 %v1732_v41, %v1731_v55 }
 0xbf5   :  { %v1736_v58 = vsel %vm94_vm0, %v1734_v56, 0.0  ;;  %v1746_v12 = vmul.f32 %v1734_v56, %v1734_v56 }
 0xbf6   :  { %v1737_v59 = vadd.f32 %v1736_v58, %v1735_v57 }
 0xbf7   :  { %v1748_v24 = vsel %vm94_vm0, %v1746_v12, 0.0 }
 0xbf8   :  { %v1738_v62 = vrot.slane %v1737_v59, 4  ;;  %v1749_v63 = vadd.f32 %v1748_v24, %v1747_v61 }
 0xbfa   :  { %v1739_v1 = vadd.f32 %v1738_v62, %v1737_v59  ;;  %v1750_v4 = vrot.slane %v1749_v63, 4 }
 0xbfc   :  { %v1740_v26 = vrot.slane %v1739_v1, 2  ;;  %v1751_v6 = vadd.f32 %v1750_v4, %v1749_v63 }
 0xbfe   :  { %v1741_v7 = vadd.f32 %v1740_v26, %v1739_v1  ;;  %v1752_v40 = vrot.slane %v1751_v6, 2 }
 0xc00   :  { %v1742_v60 = vrot.slane %v1741_v7, 1  ;;  %v1753_v8 = vadd.f32 %v1752_v40, %v1751_v6 }
 0xc02   :  { %v1743_v10 = vadd.f32 %v1742_v60, %v1741_v7  ;;  %v1754_v11 = vrot.slane %v1753_v8, 1 }
 0xc04   :  { %v1744_v0 = vmul.f32 0.0625, %v1743_v10  ;;  %v1755_v31 = vadd.f32 %v1754_v11, %v1753_v8 }
 0xc06   :  { %v1756_v14 = vmul.f32 0.0625, %v1755_v31  ;;  %v1757_v16 = vmul.f32 %v1744_v0, %v1744_v0  ;;  %v1761_v34 = vsub.f32 %v1734_v56, %v1744_v0  ;;  %v1760_v37 = vsub.f32 %v1733_v54, %v1744_v0 }
 0xc08   :  { %v1758_v9 = vsub.f32 %v1756_v14, %v1757_v16 }
 0xc0a   :  { %v1759_v33 = vmax.f32 %v1758_v9, 0.0 }
 0xc0c   :  { %v1762_v18 = vadd.f32 1e-05, %v1759_v33 }
 0xc0e   :  { %2088 = vrsqrt.f32 %v1762_v18  ;;  %vm1769_vm6 = vweird.f32 %v1762_v18 }
 0xc14   :  { %v2089_v19 = vpop.eup %2088 }
 0xc15   :  { %v1764_v20 = vmul.f32 %v2089_v19, %v1762_v18  ;;  %vm1770_vm14 = vweird.f32 %v2089_v19 }
 0xc16   :  { %vm1771_vm7 = vmor %vm1769_vm6, %vm1770_vm14 }
 0xc17   :  { %v1765_v25 = vmul.f32 %v2089_v19, %v1764_v20 }
 0xc19   :  { %v1766_v27 = vmul.f32 0.5, %v1765_v25 }
 0xc1b   :  { %v1767_v21 = vsub.f32 1.5, %v1766_v27 }
 0xc1d   :  { %v1768_v17 = vmul.f32 %v2089_v19, %v1767_v21 }
 0xc1f   :  { %v1772_v30 = vsel %vm1771_vm7, %v2089_v19, %v1768_v17 }
 0xc20   :  { %v1773_v32 = vmul.f32 %v2091_v13, %v1772_v30 }
 0xc22   :  { %v1774_v35 = vperm.slane %v1773_v32, 6 }
 0xc24   :  { %v1776_v38 = vmul.f32 %v1774_v35, %v1761_v34  ;;  %v1775_v36 = vmul.f32 %v1774_v35, %v1760_v37 }
 0xc26   :  { %v1778_v3 = vadd.f32 %v1777_v5, %v1775_v36  ;;  %v1779_v39 = vadd.f32 %v1777_v5, %v1776_v38 }
 0xc28   :  { %1780 = vst.msk [vmem:[#allocation7] sm:$0xff] %vm94_vm0, %v1778_v3 }
 0xc29   :  { %1781 = vst.msk [vmem:[#allocation7 + $0x8] sm:$0xff] %vm94_vm0, %v1779_v39 }
 0xc2a   :  { %1794 = dma.vmem_to_hbm [thread:$0]  %s1787_s9, 256, %s1789_s25, [#allocation4], %s2171_s29, %s2171_s29, %s2172_s30  }
 0xc2b   :  { %2168 = dma.done.wait [#allocation4], 256  }
 0xc2c   :  { %2169 = vsyncadd [#allocation4], 4294967040 }
 0xc2d   :  { %1799 = vsyncpa [#allocation3], 1 }
 0xc2e   :  { %1800 = vsyncpa [#allocation6], 1 }
 0xc2f   :  { %1801 = vsyncpa [#allocation4], 1 }

</bundles_post_ra>
